<compile_context>
chip_gen: v7x
topology: tpu7x:2x2x1
jax: 0.10.0
libtpu: 0.0.40
codegen_flags: <defaults>
</compile_context>

<pallas_src>
import math

import jax
import jax.numpy as jnp
from jax.experimental import pallas as pl
from jax.experimental.pallas import tpu as pltpu

VMEM_LIMIT = 32 * 1024 * 1024  # conservative: <= scoped default on v5e/v6e/v7x


def _pick(dim, target):
    """Largest 'nice' tile <= target that divides dim (falls back to full dim)."""
    for t in (target, target // 2, target // 4, 256, 128, 64, 32, 16, 8):
        if 0 < t <= dim and dim % t == 0:
            return t
    return dim


def _erf(x):
    # Abramowitz & Stegun 7.1.26 (max abs err ~1.5e-7) -> matches exact-erf GELU.
    a1, a2, a3, a4, a5 = (0.254829592, -0.284496736, 1.421413741,
                          -1.453152027, 1.061405429)
    p = 0.3275911
    s = jnp.where(x < 0.0, -1.0, 1.0)
    ax = jnp.abs(x)
    t = 1.0 / (1.0 + p * ax)
    poly = ((((a5 * t + a4) * t + a3) * t + a2) * t + a1) * t
    return s * (1.0 - poly * jnp.exp(-ax * ax))


# --------------------------- fused LN + matmul kernel -------------------------

def ln_matmul(x2d, gamma, beta, w, bias=None, gelu=False,
              out_dtype=jnp.bfloat16, tm_target=256, tn_target=256):
    """out = [GELU]( layernorm(x) @ w [+ bias] ).  K (=C) kept whole per block."""
    M, K = x2d.shape
    _, N = w.shape
    tm = _pick(M, tm_target)
    tn = _pick(N, tn_target)
    has_bias = bias is not None

    def kernel(*refs):
        if has_bias:
            x_ref, g_ref, b_ref, w_ref, bias_ref, o_ref = refs
        else:
            x_ref, g_ref, b_ref, w_ref, o_ref = refs
        x = x_ref[...].astype(jnp.float32)
        mu = jnp.mean(x, axis=-1, keepdims=True)
        var = jnp.mean(jnp.square(x - mu), axis=-1, keepdims=True)
        h = (x - mu) * jax.lax.rsqrt(var + 1e-5) * g_ref[...] + b_ref[...]
        acc = jnp.dot(h.astype(w_ref.dtype), w_ref[...],
                      preferred_element_type=jnp.float32)
        if has_bias:
            acc = acc + bias_ref[...]
        if gelu:
            acc = 0.5 * acc * (1.0 + _erf(acc * (1.0 / math.sqrt(2.0))))
        o_ref[...] = acc.astype(o_ref.dtype)

    in_specs = [
        pl.BlockSpec((tm, K), lambda i, j: (i, 0)),
        pl.BlockSpec((1, K), lambda i, j: (0, 0)),
        pl.BlockSpec((1, K), lambda i, j: (0, 0)),
        pl.BlockSpec((K, tn), lambda i, j: (0, j)),
    ]
    args = [x2d, gamma.reshape(1, K), beta.reshape(1, K), w]
    if has_bias:
        in_specs.append(pl.BlockSpec((1, tn), lambda i, j: (0, j)))
        args.append(bias.reshape(1, N).astype(jnp.float32))

    return pl.pallas_call(
        kernel,
        out_shape=jax.ShapeDtypeStruct((M, N), out_dtype),
        grid=(M // tm, N // tn),
        in_specs=in_specs,
        out_specs=pl.BlockSpec((tm, tn), lambda i, j: (i, j)),
        compiler_params=pltpu.CompilerParams(
            dimension_semantics=("parallel", "parallel"),
            vmem_limit_bytes=VMEM_LIMIT),
    )(*args)


# ---------------------- tiled matmul + bias + residual ------------------------

def matmul_bias_residual(x2d, w, bias, res,
                         tm_target=256, tn_target=256, tk_target=512):
    """out = x @ w + bias + res   (K-tiled with f32 accumulator scratch)."""
    M, K = x2d.shape
    _, N = w.shape
    tm = _pick(M, tm_target)
    tn = _pick(N, tn_target)
    tk = _pick(K, tk_target)

    def kernel(x_ref, w_ref, bias_ref, res_ref, o_ref, acc_ref):
        @pl.when(pl.program_id(2) == 0)
        def _():
            acc_ref[...] = jnp.zeros_like(acc_ref)

        acc_ref[...] += jnp.dot(x_ref[...], w_ref[...],
                                preferred_element_type=jnp.float32)

        @pl.when(pl.program_id(2) == pl.num_programs(2) - 1)
        def _():
            o_ref[...] = (acc_ref[...] + bias_ref[...]
                          + res_ref[...].astype(jnp.float32)).astype(o_ref.dtype)

    return pl.pallas_call(
        kernel,
        out_shape=jax.ShapeDtypeStruct((M, N), jnp.float32),
        grid=(M // tm, N // tn, K // tk),
        in_specs=[
            pl.BlockSpec((tm, tk), lambda i, j, k: (i, k)),
            pl.BlockSpec((tk, tn), lambda i, j, k: (k, j)),
            pl.BlockSpec((1, tn), lambda i, j, k: (0, j)),
            pl.BlockSpec((tm, tn), lambda i, j, k: (i, j)),
        ],
        out_specs=pl.BlockSpec((tm, tn), lambda i, j, k: (i, j)),
        scratch_shapes=[pltpu.VMEM((tm, tn), jnp.float32)],
        compiler_params=pltpu.CompilerParams(
            dimension_semantics=("parallel", "parallel", "arbitrary"),
            vmem_limit_bytes=VMEM_LIMIT),
    )(x2d, w, bias.reshape(1, N).astype(jnp.float32), res)


# ------------------------ flash-style GQA attention ---------------------------

def flash_gqa_attention(q, k, v, gqa):
    """q: (B, H, T, D) bf16,  k/v: (B, KH, T, D) bf16  ->  (B, H, T, D) bf16."""
    B, H, T, D = q.shape
    KH = k.shape[1]
    tq = _pick(T, 128)
    tk = _pick(T, 128)
    nq, nk = T // tq, T // tk
    scale = 1.0 / math.sqrt(D)
    NEG = -1e30

    def kernel(q_ref, k_ref, v_ref, o_ref, m_ref, l_ref, acc_ref):
        qi = pl.program_id(3)
        ki = pl.program_id(4)

        @pl.when(ki == 0)
        def _():
            m_ref[...] = jnp.full_like(m_ref, NEG)
            l_ref[...] = jnp.zeros_like(l_ref)
            acc_ref[...] = jnp.zeros_like(acc_ref)

        # Skip KV blocks entirely above the causal diagonal.
        @pl.when(ki * tk <= qi * tq + (tq - 1))
        def _():
            qb = q_ref[0, 0, :, :]
            kb = k_ref[0, 0, :, :]
            vb = v_ref[0, 0, :, :]
            s = jax.lax.dot_general(qb, kb, (((1,), (1,)), ((), ())),
                                    preferred_element_type=jnp.float32) * scale
            row = qi * tq + jax.lax.broadcasted_iota(jnp.int32, (tq, tk), 0)
            col = ki * tk + jax.lax.broadcasted_iota(jnp.int32, (tq, tk), 1)
            s = jnp.where(col <= row, s, NEG)
            m_prev = m_ref[...]
            m_new = jnp.maximum(m_prev, jnp.max(s, axis=-1, keepdims=True))
            alpha = jnp.exp(m_prev - m_new)
            p = jnp.exp(s - m_new)
            l_ref[...] = alpha * l_ref[...] + jnp.sum(p, axis=-1, keepdims=True)
            acc_ref[...] = alpha * acc_ref[...] + jnp.dot(
                p.astype(vb.dtype), vb, preferred_element_type=jnp.float32)
            m_ref[...] = m_new

        @pl.when(ki == nk - 1)
        def _():
            o_ref[0, 0, :, :] = (
                acc_ref[...] * pl.reciprocal(l_ref[...], approx=True)
            ).astype(o_ref.dtype)

    # Grid orders the gqa query-heads sharing a KV group consecutively; the k/v
    # index_maps ignore the gqa axis.  KV reduction axis is last / "arbitrary".
    return pl.pallas_call(
        kernel,
        out_shape=jax.ShapeDtypeStruct((B, H, T, D), q.dtype),
        grid=(B, KH, gqa, nq, nk),
        in_specs=[
            pl.BlockSpec((1, 1, tq, D),
                         lambda b, kh, g, qi, ki: (b, kh * gqa + g, qi, 0)),
            pl.BlockSpec((1, 1, tk, D),
                         lambda b, kh, g, qi, ki: (b, kh, ki, 0)),
            pl.BlockSpec((1, 1, tk, D),
                         lambda b, kh, g, qi, ki: (b, kh, ki, 0)),
        ],
        out_specs=pl.BlockSpec((1, 1, tq, D),
                               lambda b, kh, g, qi, ki: (b, kh * gqa + g, qi, 0)),
        scratch_shapes=[
            pltpu.VMEM((tq, 1), jnp.float32),   # running max m
            pltpu.VMEM((tq, 1), jnp.float32),   # running denom l
            pltpu.VMEM((tq, D), jnp.float32),   # output accumulator
        ],
        compiler_params=pltpu.CompilerParams(
            dimension_semantics=("parallel", "parallel", "parallel",
                                 "parallel", "arbitrary"),
            vmem_limit_bytes=VMEM_LIMIT),
    )(q, k, v)
    # TODO(synk): write the per-head output as a lane-dense (T, H*D) slab to
    # avoid the masked (<128-lane) store when head_dim < 128.


# ------------------------------ Parameters ------------------------------------

def init_params(key, cfg):
    C, V, L = cfg["n_embd"], cfg["vocab_size"], cfg["n_layer"]
    H, KH = cfg["n_head"], cfg["kv_heads"]
    gqa = H // KH
    kv_dim = C // gqa
    std = C ** (-0.5)
    res_std = std * (2 * L) ** (-0.5)
    keys = iter(jax.random.split(key, 2 + 4 * L))

    def normal(shape, s):
        return (s * jax.random.normal(next(keys), shape, jnp.float32))

    wte = normal((V, C), std).astype(jnp.bfloat16)          # tied with lm_head
    params = {
        "wte": wte,
        "lm_head_w": wte.T,                                 # pre-transposed (C, V)
        "wpe": normal((cfg["block_size"], C), std),
        "lnf_g": jnp.ones((C,), jnp.float32),
        "lnf_b": jnp.zeros((C,), jnp.float32),
        "blocks": [],
    }
    for _ in range(L):
        params["blocks"].append({
            "ln1_g": jnp.ones((C,), jnp.float32),
            "ln1_b": jnp.zeros((C,), jnp.float32),
            # fused (in, out) QKV weight: [q | k | v], no bias
            "qkv_w": normal((C, C + 2 * kv_dim), std).astype(jnp.bfloat16),
            "attn_proj_w": normal((C, C), res_std).astype(jnp.bfloat16),
            "attn_proj_b": jnp.zeros((C,), jnp.float32),
            "ln2_g": jnp.ones((C,), jnp.float32),
            "ln2_b": jnp.zeros((C,), jnp.float32),
            "fc_w": normal((C, 4 * C), std).astype(jnp.bfloat16),
            "fc_b": jnp.zeros((4 * C,), jnp.float32),
            "proj_w": normal((4 * C, C), res_std).astype(jnp.bfloat16),
            "proj_b": jnp.zeros((C,), jnp.float32),
        })
    return params


# ------------------------------ Forward pass ----------------------------------

def gpt_forward(params, idx, cfg):
    B, T = idx.shape
    if T > cfg["block_size"]:
        idx = idx[:, :cfg["block_size"]]
        T = cfg["block_size"]
    C, H, KH = cfg["n_embd"], cfg["n_head"], cfg["kv_heads"]
    gqa = H // KH
    D = C // H
    kv_dim = KH * D

    # embedding gather + positional add: plain-JAX glue
    x2d = (params["wte"][idx].astype(jnp.float32)
           + params["wpe"][:T][None, :, :]).reshape(B * T, C)

    for blk in params["blocks"]:
        # ---- attention: fused LN + QKV matmul -> flash GQA -> proj + residual
        qkv = ln_matmul(x2d, blk["ln1_g"], blk["ln1_b"], blk["qkv_w"],
                        bias=None, gelu=False, out_dtype=jnp.bfloat16)
        q = qkv[:, :C].reshape(B, T, H, D).transpose(0, 2, 1, 3)
        k = qkv[:, C:C + kv_dim].reshape(B, T, KH, D).transpose(0, 2, 1, 3)
        v = qkv[:, C + kv_dim:].reshape(B, T, KH, D).transpose(0, 2, 1, 3)
        a = flash_gqa_attention(q, k, v, gqa)                   # (B, H, T, D)
        a2d = a.transpose(0, 2, 1, 3).reshape(B * T, C)
        x2d = matmul_bias_residual(a2d, blk["attn_proj_w"],
                                   blk["attn_proj_b"], x2d)
        # ---- MLP: fused LN + FC + GELU, then proj + residual
        h = ln_matmul(x2d, blk["ln2_g"], blk["ln2_b"], blk["fc_w"],
                      bias=blk["fc_b"], gelu=True, out_dtype=jnp.bfloat16)
        x2d = matmul_bias_residual(h, blk["proj_w"], blk["proj_b"], x2d)

    # final LN fused into the (vocab-tiled) tied lm_head, no bias
    logits = ln_matmul(x2d, params["lnf_g"], params["lnf_b"],
                       params["lm_head_w"], bias=None, gelu=False,
                       out_dtype=jnp.float32)
    return logits.reshape(B, T, -1)
    # TODO(synk): targets/cross-entropy loss path, generate() sampling loop and
    # configure_optimizer are not implemented (forward with targets=None only).


# ------------------------------ Pure-JAX reference ----------------------------

def ref_forward(params, idx, cfg):
    B, T = idx.shape
    C, H, KH = cfg["n_embd"], cfg["n_head"], cfg["kv_heads"]
    gqa = H // KH
    D = C // H
    kv_dim = KH * D
    f32, bf16 = jnp.float32, jnp.bfloat16

    def ln(x, g, b):
        mu = x.mean(-1, keepdims=True)
        var = ((x - mu) ** 2).mean(-1, keepdims=True)
        return (x - mu) * jax.lax.rsqrt(var + 1e-5) * g + b

    def mm(a, w):  # bf16 x bf16 -> f32 accumulate (mirrors kernel math)
        return jax.lax.dot_general(a.astype(bf16), w,
                                   (((a.ndim - 1,), (0,)), ((), ())),
                                   preferred_element_type=f32)

    x = params["wte"][idx].astype(f32) + params["wpe"][:T][None].astype(f32)
    for blk in params["blocks"]:
        h = ln(x, blk["ln1_g"], blk["ln1_b"])
        qkv = mm(h, blk["qkv_w"]).astype(bf16)
        q = qkv[..., :C].reshape(B, T, H, D).transpose(0, 2, 1, 3)
        k = qkv[..., C:C + kv_dim].reshape(B, T, KH, D).transpose(0, 2, 1, 3)
        v = qkv[..., C + kv_dim:].reshape(B, T, KH, D).transpose(0, 2, 1, 3)
        k = jnp.repeat(k, gqa, axis=1)
        v = jnp.repeat(v, gqa, axis=1)
        s = jnp.einsum("bhqd,bhkd->bhqk", q, k,
                       preferred_element_type=f32) / math.sqrt(D)
        mask = jnp.tril(jnp.ones((T, T), bool))
        s = jnp.where(mask, s, -jnp.inf)
        p = jax.nn.softmax(s, axis=-1)
        a = jnp.einsum("bhqk,bhkd->bhqd", p.astype(bf16), v,
                       preferred_element_type=f32).astype(bf16)
        a = a.transpose(0, 2, 1, 3).reshape(B, T, C)
        x = x + mm(a, blk["attn_proj_w"]) + blk["attn_proj_b"]
        h = ln(x, blk["ln2_g"], blk["ln2_b"])
        h = jax.nn.gelu(mm(h, blk["fc_w"]) + blk["fc_b"],
                        approximate=False).astype(bf16)
        x = x + mm(h, blk["proj_w"]) + blk["proj_b"]
    x = ln(x, params["lnf_g"], params["lnf_b"])
    return mm(x, params["lm_head_w"])


# ------------------------------ Main -------------------------------------------

if __name__ == "__main__":
    cfg = dict(vocab_size=64, block_size=16, n_embd=32,
               n_head=4, kv_heads=2, n_layer=2)
    key = jax.random.PRNGKey(0)
    pkey, ikey = jax.random.split(key)
    params = init_params(pkey, cfg)

    B, T = 2, 8
    idx = jax.random.randint(ikey, (B, T), 0, cfg["vocab_size"], dtype=jnp.int32)

    fwd = jax.jit(lambda p, i: gpt_forward(p, i, cfg))
    logits = jax.block_until_ready(fwd(params, idx))
    assert logits.shape == (B, T, cfg["vocab_size"])

    ref = jax.block_until_ready(ref_forward(params, idx, cfg))
    err = float(jnp.max(jnp.abs(logits - ref)))
    assert err < 2e-2, f"max abs err {err}"

    print("KERNEL_OK")
</pallas_src>

<mosaic_0001>
module attributes {stable_mosaic.version = 11 : i64} {
  func.func @kernel(%arg0: i32, %arg1: i32, %arg2: memref<16x32xf32, #tpu.memory_space<vmem>>, %arg3: memref<1x32xf32, #tpu.memory_space<vmem>>, %arg4: memref<1x32xf32, #tpu.memory_space<vmem>>, %arg5: memref<32x64xbf16, #tpu.memory_space<vmem>>, %arg6: memref<16x64xbf16, #tpu.memory_space<vmem>>) attributes {dimension_semantics = [#tpu.dimension_semantics<parallel>, #tpu.dimension_semantics<parallel>], iteration_bounds = array<i64: 1, 1>, scalar_prefetch = 0 : i64, scratch_operands = 0 : i64, tpu.core_type = #tpu.core_type<tc>, window_params = [{transform_indices = @transform_0, window_bounds = array<i64: 16, 32>}, {pipeline_mode = #tpu.pipeline_mode<synchronous>, transform_indices = @transform_1, window_bounds = array<i64: 1, 32>}, {pipeline_mode = #tpu.pipeline_mode<synchronous>, transform_indices = @transform_2, window_bounds = array<i64: 1, 32>}, {transform_indices = @transform_3, window_bounds = array<i64: 32, 64>}, {transform_indices = @transform_4, window_bounds = array<i64: 16, 64>}]} {
    %c0 = arith.constant 0 : index
    %c0_0 = arith.constant 0 : index
    %0 = vector.load %arg2[%c0, %c0_0] : memref<16x32xf32, #tpu.memory_space<vmem>>, vector<16x32xf32>
    %cst = arith.constant dense<0.000000e+00> : vector<16xf32>
    %1 = vector.multi_reduction <add>, %0, %cst [1] : vector<16x32xf32> to vector<16xf32>
    %2 = vector.shape_cast %1 : vector<16xf32> to vector<16x1xf32>
    %cst_1 = arith.constant 3.200000e+01 : f32
    %3 = vector.broadcast %cst_1 : f32 to vector<16x1xf32>
    %4 = arith.divf %2, %3 : vector<16x1xf32>
    %5 = vector.broadcast %4 : vector<16x1xf32> to vector<16x32xf32>
    %6 = arith.subf %0, %5 : vector<16x32xf32>
    %7 = arith.mulf %6, %6 : vector<16x32xf32>
    %cst_2 = arith.constant dense<0.000000e+00> : vector<16xf32>
    %8 = vector.multi_reduction <add>, %7, %cst_2 [1] : vector<16x32xf32> to vector<16xf32>
    %9 = vector.shape_cast %8 : vector<16xf32> to vector<16x1xf32>
    %cst_3 = arith.constant 3.200000e+01 : f32
    %10 = vector.broadcast %cst_3 : f32 to vector<16x1xf32>
    %11 = arith.divf %9, %10 : vector<16x1xf32>
    %12 = vector.broadcast %4 : vector<16x1xf32> to vector<16x32xf32>
    %13 = arith.subf %0, %12 : vector<16x32xf32>
    %cst_4 = arith.constant 9.99999974E-6 : f32
    %14 = vector.broadcast %cst_4 : f32 to vector<16x1xf32>
    %15 = arith.addf %11, %14 : vector<16x1xf32>
    %16 = math.rsqrt %15 : vector<16x1xf32>
    %17 = vector.broadcast %16 : vector<16x1xf32> to vector<16x32xf32>
    %18 = arith.mulf %13, %17 : vector<16x32xf32>
    %c0_5 = arith.constant 0 : index
    %c0_6 = arith.constant 0 : index
    %19 = vector.load %arg3[%c0_5, %c0_6] : memref<1x32xf32, #tpu.memory_space<vmem>>, vector<1x32xf32>
    %20 = vector.broadcast %19 : vector<1x32xf32> to vector<16x32xf32>
    %21 = arith.mulf %18, %20 : vector<16x32xf32>
    %c0_7 = arith.constant 0 : index
    %c0_8 = arith.constant 0 : index
    %22 = vector.load %arg4[%c0_7, %c0_8] : memref<1x32xf32, #tpu.memory_space<vmem>>, vector<1x32xf32>
    %23 = vector.broadcast %22 : vector<1x32xf32> to vector<16x32xf32>
    %24 = arith.addf %21, %23 : vector<16x32xf32>
    %25 = arith.truncf %24 : vector<16x32xf32> to vector<16x32xbf16>
    %c0_9 = arith.constant 0 : index
    %c0_10 = arith.constant 0 : index
    %26 = vector.load %arg5[%c0_9, %c0_10] : memref<32x64xbf16, #tpu.memory_space<vmem>>, vector<32x64xbf16>
    %cst_11 = arith.constant dense<0.000000e+00> : vector<16x64xf32>
    %27 = tpu.matmul %25, %26, %cst_11 {dimension_numbers = #tpu.dot_dimension_numbers<[1], [0], [0], [1], [0, 0, 1, 1], [], []>} : vector<16x32xbf16>, vector<32x64xbf16>, vector<16x64xf32> -> vector<16x64xf32>
    %28 = arith.truncf %27 : vector<16x64xf32> to vector<16x64xbf16>
    %c0_12 = arith.constant 0 : index
    %c0_13 = arith.constant 0 : index
    %29 = vector.load %arg6[%c0_12, %c0_13] : memref<16x64xbf16, #tpu.memory_space<vmem>>, vector<16x64xbf16>
    tpu.vector_store %arg6[%c0_12, %c0_13], %28 {strides = array<i32>} : memref<16x64xbf16, #tpu.memory_space<vmem>>, vector<16x64xbf16>,
    return
  }
  func.func @transform_0(%arg0: i32, %arg1: i32) -> (i32, i32) {
    %c0_i32 = arith.constant 0 : i32
    %c0_i32_0 = arith.constant 0 : i32
    return %arg0, %c0_i32 : i32, i32
  }
  func.func @transform_1(%arg0: i32, %arg1: i32) -> (i32, i32) {
    %c0_i32 = arith.constant 0 : i32
    %c0_i32_0 = arith.constant 0 : i32
    %c0_i32_1 = arith.constant 0 : i32
    return %c0_i32, %c0_i32_0 : i32, i32
  }
  func.func @transform_2(%arg0: i32, %arg1: i32) -> (i32, i32) {
    %c0_i32 = arith.constant 0 : i32
    %c0_i32_0 = arith.constant 0 : i32
    %c0_i32_1 = arith.constant 0 : i32
    return %c0_i32, %c0_i32_0 : i32, i32
  }
  func.func @transform_3(%arg0: i32, %arg1: i32) -> (i32, i32) {
    %c0_i32 = arith.constant 0 : i32
    %c0_i32_0 = arith.constant 0 : i32
    return %c0_i32, %arg1 : i32, i32
  }
  func.func @transform_4(%arg0: i32, %arg1: i32) -> (i32, i32) {
    %c0_i32 = arith.constant 0 : i32
    return %arg0, %arg1 : i32, i32
  }
}

module attributes {stable_mosaic.version = 11 : i64} {
  func.func @kernel(%arg0: i32, %arg1: i32, %arg2: i32, %arg3: i32, %arg4: i32, %arg5: memref<1x1x8x8xbf16, #tpu.memory_space<vmem>>, %arg6: memref<1x1x8x8xbf16, #tpu.memory_space<vmem>>, %arg7: memref<1x1x8x8xbf16, #tpu.memory_space<vmem>>, %arg8: memref<1x1x8x8xbf16, #tpu.memory_space<vmem>>, %arg9: memref<8x1xf32, #tpu.memory_space<vmem>>, %arg10: memref<8x1xf32, #tpu.memory_space<vmem>>, %arg11: memref<8x8xf32, #tpu.memory_space<vmem>>) attributes {dimension_semantics = [#tpu.dimension_semantics<parallel>, #tpu.dimension_semantics<parallel>, #tpu.dimension_semantics<parallel>, #tpu.dimension_semantics<parallel>, #tpu.dimension_semantics<arbitrary>], iteration_bounds = array<i64: 2, 2, 2, 1, 1>, scalar_prefetch = 0 : i64, scratch_operands = 3 : i64, tpu.core_type = #tpu.core_type<tc>, window_params = [{transform_indices = @transform_0, window_bounds = array<i64: 1, 1, 8, 8>}, {transform_indices = @transform_1, window_bounds = array<i64: 1, 1, 8, 8>}, {transform_indices = @transform_2, window_bounds = array<i64: 1, 1, 8, 8>}, {transform_indices = @transform_3, window_bounds = array<i64: 1, 1, 8, 8>}]} {
    %c0_i32 = arith.constant 0 : i32
    %0 = arith.cmpi eq, %arg4, %c0_i32 : i32
    %1 = arith.extui %0 : i1 to i32
    %c0_i32_0 = arith.constant 0 : i32
    %2 = arith.cmpi ne, %1, %c0_i32_0 : i32
    scf.if %2 {
      %cst = arith.constant -1.000000e+30 : f32
      %12 = vector.broadcast %cst : f32 to vector<8x1xf32>
      %c0 = arith.constant 0 : index
      %c0_5 = arith.constant 0 : index
      %13 = vector.load %arg9[%c0, %c0_5] : memref<8x1xf32, #tpu.memory_space<vmem>>, vector<8x1xf32>
      tpu.vector_store %arg9[%c0, %c0_5], %12 {strides = array<i32>} : memref<8x1xf32, #tpu.memory_space<vmem>>, vector<8x1xf32>,
      %cst_6 = arith.constant 0.000000e+00 : f32
      %14 = vector.broadcast %cst_6 : f32 to vector<8x1xf32>
      %c0_7 = arith.constant 0 : index
      %c0_8 = arith.constant 0 : index
      %15 = vector.load %arg10[%c0_7, %c0_8] : memref<8x1xf32, #tpu.memory_space<vmem>>, vector<8x1xf32>
      tpu.vector_store %arg10[%c0_7, %c0_8], %14 {strides = array<i32>} : memref<8x1xf32, #tpu.memory_space<vmem>>, vector<8x1xf32>,
      %cst_9 = arith.constant 0.000000e+00 : f32
      %16 = vector.broadcast %cst_9 : f32 to vector<8x8xf32>
      %c0_10 = arith.constant 0 : index
      %c0_11 = arith.constant 0 : index
      %17 = vector.load %arg11[%c0_10, %c0_11] : memref<8x8xf32, #tpu.memory_space<vmem>>, vector<8x8xf32>
      tpu.vector_store %arg11[%c0_10, %c0_11], %16 {strides = array<i32>} : memref<8x8xf32, #tpu.memory_space<vmem>>, vector<8x8xf32>,
    } else {
    }
    %c8_i32 = arith.constant 8 : i32
    %3 = arith.muli %arg4, %c8_i32 : i32
    %c8_i32_1 = arith.constant 8 : i32
    %4 = arith.muli %arg3, %c8_i32_1 : i32
    %c7_i32 = arith.constant 7 : i32
    %5 = arith.addi %4, %c7_i32 : i32
    %6 = arith.cmpi sle, %3, %5 : i32
    %7 = arith.extui %6 : i1 to i32
    %c0_i32_2 = arith.constant 0 : i32
    %8 = arith.cmpi ne, %7, %c0_i32_2 : i32
    scf.if %8 {
      %c0 = arith.constant 0 : index
      %c0_5 = arith.constant 0 : index
      %c0_6 = arith.constant 0 : index
      %c0_7 = arith.constant 0 : index
      %12 = vector.load %arg5[%c0, %c0_5, %c0_6, %c0_7] : memref<1x1x8x8xbf16, #tpu.memory_space<vmem>>, vector<1x1x8x8xbf16>
      %13 = vector.shape_cast %12 : vector<1x1x8x8xbf16> to vector<8x8xbf16>
      %c0_8 = arith.constant 0 : index
      %c0_9 = arith.constant 0 : index
      %c0_10 = arith.constant 0 : index
      %c0_11 = arith.constant 0 : index
      %14 = vector.load %arg6[%c0_8, %c0_9, %c0_10, %c0_11] : memref<1x1x8x8xbf16, #tpu.memory_space<vmem>>, vector<1x1x8x8xbf16>
      %15 = vector.shape_cast %14 : vector<1x1x8x8xbf16> to vector<8x8xbf16>
      %c0_12 = arith.constant 0 : index
      %c0_13 = arith.constant 0 : index
      %c0_14 = arith.constant 0 : index
      %c0_15 = arith.constant 0 : index
      %16 = vector.load %arg7[%c0_12, %c0_13, %c0_14, %c0_15] : memref<1x1x8x8xbf16, #tpu.memory_space<vmem>>, vector<1x1x8x8xbf16>
      %17 = vector.shape_cast %16 : vector<1x1x8x8xbf16> to vector<8x8xbf16>
      %cst = arith.constant dense<0.000000e+00> : vector<8x8xf32>
      %18 = tpu.matmul %13, %15, %cst {dimension_numbers = #tpu.dot_dimension_numbers<[1], [1], [0], [0], [0, 0, 1, 0], [], []>} : vector<8x8xbf16>, vector<8x8xbf16>, vector<8x8xf32> -> vector<8x8xf32>
      %cst_16 = arith.constant 0.353553385 : f32
      %19 = vector.broadcast %cst_16 : f32 to vector<8x8xf32>
      %20 = arith.mulf %18, %19 : vector<8x8xf32>
      %c8_i32_17 = arith.constant 8 : i32
      %21 = arith.muli %arg3, %c8_i32_17 : i32
      %22 = tpu.iota {dimensions = array<i32: 0>} : vector<8x8xi32>
      %23 = vector.broadcast %21 : i32 to vector<8x8xi32>
      %24 = arith.addi %23, %22 : vector<8x8xi32>
      %c8_i32_18 = arith.constant 8 : i32
      %25 = arith.muli %arg4, %c8_i32_18 : i32
      %26 = tpu.iota {dimensions = array<i32: 1>} : vector<8x8xi32>
      %27 = vector.broadcast %25 : i32 to vector<8x8xi32>
      %28 = arith.addi %27, %26 : vector<8x8xi32>
      %29 = arith.cmpi sle, %28, %24 : vector<8x8xi32>
      %cst_19 = arith.constant -1.000000e+30 : f32
      %30 = vector.broadcast %cst_19 : f32 to vector<8x8xf32>
      %31 = arith.select %29, %20, %30 : vector<8x8xi1>, vector<8x8xf32>
      %c0_20 = arith.constant 0 : index
      %c0_21 = arith.constant 0 : index
      %32 = vector.load %arg9[%c0_20, %c0_21] : memref<8x1xf32, #tpu.memory_space<vmem>>, vector<8x1xf32>
      %cst_22 = arith.constant dense<0xFF800000> : vector<8xf32>
      %33 = vector.multi_reduction <maximumf>, %31, %cst_22 [1] : vector<8x8xf32> to vector<8xf32>
      %34 = vector.shape_cast %33 : vector<8xf32> to vector<8x1xf32>
      %35 = arith.maximumf %32, %34 : vector<8x1xf32>
      %36 = arith.subf %32, %35 : vector<8x1xf32>
      %37 = math.exp %36 : vector<8x1xf32>
      %38 = vector.broadcast %35 : vector<8x1xf32> to vector<8x8xf32>
      %39 = arith.subf %31, %38 : vector<8x8xf32>
      %40 = math.exp %39 : vector<8x8xf32>
      %c0_23 = arith.constant 0 : index
      %c0_24 = arith.constant 0 : index
      %41 = vector.load %arg10[%c0_23, %c0_24] : memref<8x1xf32, #tpu.memory_space<vmem>>, vector<8x1xf32>
      %42 = arith.mulf %37, %41 : vector<8x1xf32>
      %cst_25 = arith.constant dense<0.000000e+00> : vector<8xf32>
      %43 = vector.multi_reduction <add>, %40, %cst_25 [1] : vector<8x8xf32> to vector<8xf32>
      %44 = vector.shape_cast %43 : vector<8xf32> to vector<8x1xf32>
      %45 = arith.addf %42, %44 : vector<8x1xf32>
      %c0_26 = arith.constant 0 : index
      %c0_27 = arith.constant 0 : index
      %46 = vector.load %arg10[%c0_26, %c0_27] : memref<8x1xf32, #tpu.memory_space<vmem>>, vector<8x1xf32>
      tpu.vector_store %arg10[%c0_26, %c0_27], %45 {strides = array<i32>} : memref<8x1xf32, #tpu.memory_space<vmem>>, vector<8x1xf32>,
      %c0_28 = arith.constant 0 : index
      %c0_29 = arith.constant 0 : index
      %47 = vector.load %arg11[%c0_28, %c0_29] : memref<8x8xf32, #tpu.memory_space<vmem>>, vector<8x8xf32>
      %48 = vector.broadcast %37 : vector<8x1xf32> to vector<8x8xf32>
      %49 = arith.mulf %48, %47 : vector<8x8xf32>
      %50 = arith.truncf %40 : vector<8x8xf32> to vector<8x8xbf16>
      %cst_30 = arith.constant dense<0.000000e+00> : vector<8x8xf32>
      %51 = tpu.matmul %50, %17, %cst_30 {dimension_numbers = #tpu.dot_dimension_numbers<[1], [0], [0], [1], [0, 0, 1, 1], [], []>} : vector<8x8xbf16>, vector<8x8xbf16>, vector<8x8xf32> -> vector<8x8xf32>
      %52 = arith.addf %49, %51 : vector<8x8xf32>
      %c0_31 = arith.constant 0 : index
      %c0_32 = arith.constant 0 : index
      %53 = vector.load %arg11[%c0_31, %c0_32] : memref<8x8xf32, #tpu.memory_space<vmem>>, vector<8x8xf32>
      tpu.vector_store %arg11[%c0_31, %c0_32], %52 {strides = array<i32>} : memref<8x8xf32, #tpu.memory_space<vmem>>, vector<8x8xf32>,
      %c0_33 = arith.constant 0 : index
      %c0_34 = arith.constant 0 : index
      %54 = vector.load %arg9[%c0_33, %c0_34] : memref<8x1xf32, #tpu.memory_space<vmem>>, vector<8x1xf32>
      tpu.vector_store %arg9[%c0_33, %c0_34], %35 {strides = array<i32>} : memref<8x1xf32, #tpu.memory_space<vmem>>, vector<8x1xf32>,
    } else {
    }
    %c0_i32_3 = arith.constant 0 : i32
    %9 = arith.cmpi eq, %arg4, %c0_i32_3 : i32
    %10 = arith.extui %9 : i1 to i32
    %c0_i32_4 = arith.constant 0 : i32
    %11 = arith.cmpi ne, %10, %c0_i32_4 : i32
    scf.if %11 {
      %c0 = arith.constant 0 : index
      %c0_5 = arith.constant 0 : index
      %12 = vector.load %arg11[%c0, %c0_5] : memref<8x8xf32, #tpu.memory_space<vmem>>, vector<8x8xf32>
      %c0_6 = arith.constant 0 : index
      %c0_7 = arith.constant 0 : index
      %13 = vector.load %arg10[%c0_6, %c0_7] : memref<8x1xf32, #tpu.memory_space<vmem>>, vector<8x1xf32>
      %14 = tpu.reciprocal %13 {approx = true} : vector<8x1xf32> -> vector<8x1xf32>
      %15 = vector.broadcast %14 : vector<8x1xf32> to vector<8x8xf32>
      %16 = arith.mulf %12, %15 : vector<8x8xf32>
      %17 = arith.truncf %16 : vector<8x8xf32> to vector<8x8xbf16>
      %c0_8 = arith.constant 0 : index
      %c0_9 = arith.constant 0 : index
      %c0_10 = arith.constant 0 : index
      %c0_11 = arith.constant 0 : index
      %18 = vector.load %arg8[%c0_8, %c0_9, %c0_10, %c0_11] : memref<1x1x8x8xbf16, #tpu.memory_space<vmem>>, vector<1x1x8x8xbf16>
      %19 = vector.shape_cast %18 : vector<1x1x8x8xbf16> to vector<8x8xbf16>
      %20 = vector.shape_cast %17 : vector<8x8xbf16> to vector<1x1x8x8xbf16>
      tpu.vector_store %arg8[%c0_8, %c0_9, %c0_10, %c0_11], %20 {strides = array<i32>} : memref<1x1x8x8xbf16, #tpu.memory_space<vmem>>, vector<1x1x8x8xbf16>,
    } else {
    }
    return
  }
  func.func @transform_0(%arg0: i32, %arg1: i32, %arg2: i32, %arg3: i32, %arg4: i32) -> (i32, i32, i32, i32) {
    %c2_i32 = arith.constant 2 : i32
    %0 = arith.muli %arg1, %c2_i32 : i32
    %1 = arith.addi %0, %arg2 : i32
    %c0_i32 = arith.constant 0 : i32
    %c0_i32_0 = arith.constant 0 : i32
    return %arg0, %1, %arg3, %c0_i32 : i32, i32, i32, i32
  }
  func.func @transform_1(%arg0: i32, %arg1: i32, %arg2: i32, %arg3: i32, %arg4: i32) -> (i32, i32, i32, i32) {
    %c0_i32 = arith.constant 0 : i32
    %c0_i32_0 = arith.constant 0 : i32
    return %arg0, %arg1, %arg4, %c0_i32 : i32, i32, i32, i32
  }
  func.func @transform_2(%arg0: i32, %arg1: i32, %arg2: i32, %arg3: i32, %arg4: i32) -> (i32, i32, i32, i32) {
    %c0_i32 = arith.constant 0 : i32
    %c0_i32_0 = arith.constant 0 : i32
    return %arg0, %arg1, %arg4, %c0_i32 : i32, i32, i32, i32
  }
  func.func @transform_3(%arg0: i32, %arg1: i32, %arg2: i32, %arg3: i32, %arg4: i32) -> (i32, i32, i32, i32) {
    %c2_i32 = arith.constant 2 : i32
    %0 = arith.muli %arg1, %c2_i32 : i32
    %1 = arith.addi %0, %arg2 : i32
    %c0_i32 = arith.constant 0 : i32
    %c0_i32_0 = arith.constant 0 : i32
    return %arg0, %1, %arg3, %c0_i32 : i32, i32, i32, i32
  }
}

module attributes {stable_mosaic.version = 11 : i64} {
  func.func @kernel(%arg0: i32, %arg1: i32, %arg2: i32, %arg3: memref<16x32xbf16, #tpu.memory_space<vmem>>, %arg4: memref<32x32xbf16, #tpu.memory_space<vmem>>, %arg5: memref<1x32xf32, #tpu.memory_space<vmem>>, %arg6: memref<16x32xf32, #tpu.memory_space<vmem>>, %arg7: memref<16x32xf32, #tpu.memory_space<vmem>>, %arg8: memref<16x32xf32, #tpu.memory_space<vmem>>) attributes {dimension_semantics = [#tpu.dimension_semantics<parallel>, #tpu.dimension_semantics<parallel>, #tpu.dimension_semantics<arbitrary>], iteration_bounds = array<i64: 1, 1, 1>, scalar_prefetch = 0 : i64, scratch_operands = 1 : i64, tpu.core_type = #tpu.core_type<tc>, window_params = [{transform_indices = @transform_0, window_bounds = array<i64: 16, 32>}, {transform_indices = @transform_1, window_bounds = array<i64: 32, 32>}, {transform_indices = @transform_2, window_bounds = array<i64: 1, 32>}, {transform_indices = @transform_3, window_bounds = array<i64: 16, 32>}, {transform_indices = @transform_4, window_bounds = array<i64: 16, 32>}]} {
    %c0_i32 = arith.constant 0 : i32
    %0 = arith.cmpi eq, %arg2, %c0_i32 : i32
    %1 = arith.extui %0 : i1 to i32
    %c0_i32_0 = arith.constant 0 : i32
    %2 = arith.cmpi ne, %1, %c0_i32_0 : i32
    scf.if %2 {
      %cst_10 = arith.constant 0.000000e+00 : f32
      %12 = vector.broadcast %cst_10 : f32 to vector<16x32xf32>
      %c0_11 = arith.constant 0 : index
      %c0_12 = arith.constant 0 : index
      %13 = vector.load %arg8[%c0_11, %c0_12] : memref<16x32xf32, #tpu.memory_space<vmem>>, vector<16x32xf32>
      tpu.vector_store %arg8[%c0_11, %c0_12], %12 {strides = array<i32>} : memref<16x32xf32, #tpu.memory_space<vmem>>, vector<16x32xf32>,
    } else {
    }
    %c0 = arith.constant 0 : index
    %c0_1 = arith.constant 0 : index
    %3 = vector.load %arg8[%c0, %c0_1] : memref<16x32xf32, #tpu.memory_space<vmem>>, vector<16x32xf32>
    %c0_2 = arith.constant 0 : index
    %c0_3 = arith.constant 0 : index
    %4 = vector.load %arg3[%c0_2, %c0_3] : memref<16x32xbf16, #tpu.memory_space<vmem>>, vector<16x32xbf16>
    %c0_4 = arith.constant 0 : index
    %c0_5 = arith.constant 0 : index
    %5 = vector.load %arg4[%c0_4, %c0_5] : memref<32x32xbf16, #tpu.memory_space<vmem>>, vector<32x32xbf16>
    %cst = arith.constant dense<0.000000e+00> : vector<16x32xf32>
    %6 = tpu.matmul %4, %5, %cst {dimension_numbers = #tpu.dot_dimension_numbers<[1], [0], [0], [1], [0, 0, 1, 1], [], []>} : vector<16x32xbf16>, vector<32x32xbf16>, vector<16x32xf32> -> vector<16x32xf32>
    %7 = arith.addf %3, %6 : vector<16x32xf32>
    %c0_6 = arith.constant 0 : index
    %c0_7 = arith.constant 0 : index
    %8 = vector.load %arg8[%c0_6, %c0_7] : memref<16x32xf32, #tpu.memory_space<vmem>>, vector<16x32xf32>
    tpu.vector_store %arg8[%c0_6, %c0_7], %7 {strides = array<i32>} : memref<16x32xf32, #tpu.memory_space<vmem>>, vector<16x32xf32>,
    %c0_i32_8 = arith.constant 0 : i32
    %9 = arith.cmpi eq, %arg2, %c0_i32_8 : i32
    %10 = arith.extui %9 : i1 to i32
    %c0_i32_9 = arith.constant 0 : i32
    %11 = arith.cmpi ne, %10, %c0_i32_9 : i32
    scf.if %11 {
      %c0_10 = arith.constant 0 : index
      %c0_11 = arith.constant 0 : index
      %12 = vector.load %arg8[%c0_10, %c0_11] : memref<16x32xf32, #tpu.memory_space<vmem>>, vector<16x32xf32>
      %c0_12 = arith.constant 0 : index
      %c0_13 = arith.constant 0 : index
      %13 = vector.load %arg5[%c0_12, %c0_13] : memref<1x32xf32, #tpu.memory_space<vmem>>, vector<1x32xf32>
      %14 = vector.broadcast %13 : vector<1x32xf32> to vector<16x32xf32>
      %15 = arith.addf %12, %14 : vector<16x32xf32>
      %c0_14 = arith.constant 0 : index
      %c0_15 = arith.constant 0 : index
      %16 = vector.load %arg6[%c0_14, %c0_15] : memref<16x32xf32, #tpu.memory_space<vmem>>, vector<16x32xf32>
      %17 = arith.addf %15, %16 : vector<16x32xf32>
      %c0_16 = arith.constant 0 : index
      %c0_17 = arith.constant 0 : index
      %18 = vector.load %arg7[%c0_16, %c0_17] : memref<16x32xf32, #tpu.memory_space<vmem>>, vector<16x32xf32>
      tpu.vector_store %arg7[%c0_16, %c0_17], %17 {strides = array<i32>} : memref<16x32xf32, #tpu.memory_space<vmem>>, vector<16x32xf32>,
    } else {
    }
    return
  }
  func.func @transform_0(%arg0: i32, %arg1: i32, %arg2: i32) -> (i32, i32) {
    %c0_i32 = arith.constant 0 : i32
    return %arg0, %arg2 : i32, i32
  }
  func.func @transform_1(%arg0: i32, %arg1: i32, %arg2: i32) -> (i32, i32) {
    %c0_i32 = arith.constant 0 : i32
    return %arg2, %arg1 : i32, i32
  }
  func.func @transform_2(%arg0: i32, %arg1: i32, %arg2: i32) -> (i32, i32) {
    %c0_i32 = arith.constant 0 : i32
    %c0_i32_0 = arith.constant 0 : i32
    return %c0_i32, %arg1 : i32, i32
  }
  func.func @transform_3(%arg0: i32, %arg1: i32, %arg2: i32) -> (i32, i32) {
    %c0_i32 = arith.constant 0 : i32
    return %arg0, %arg1 : i32, i32
  }
  func.func @transform_4(%arg0: i32, %arg1: i32, %arg2: i32) -> (i32, i32) {
    %c0_i32 = arith.constant 0 : i32
    return %arg0, %arg1 : i32, i32
  }
}

module attributes {stable_mosaic.version = 11 : i64} {
  func.func @kernel(%arg0: i32, %arg1: i32, %arg2: memref<16x32xf32, #tpu.memory_space<vmem>>, %arg3: memref<1x32xf32, #tpu.memory_space<vmem>>, %arg4: memref<1x32xf32, #tpu.memory_space<vmem>>, %arg5: memref<32x128xbf16, #tpu.memory_space<vmem>>, %arg6: memref<1x128xf32, #tpu.memory_space<vmem>>, %arg7: memref<16x128xbf16, #tpu.memory_space<vmem>>) attributes {dimension_semantics = [#tpu.dimension_semantics<parallel>, #tpu.dimension_semantics<parallel>], iteration_bounds = array<i64: 1, 1>, scalar_prefetch = 0 : i64, scratch_operands = 0 : i64, tpu.core_type = #tpu.core_type<tc>, window_params = [{transform_indices = @transform_0, window_bounds = array<i64: 16, 32>}, {pipeline_mode = #tpu.pipeline_mode<synchronous>, transform_indices = @transform_1, window_bounds = array<i64: 1, 32>}, {pipeline_mode = #tpu.pipeline_mode<synchronous>, transform_indices = @transform_2, window_bounds = array<i64: 1, 32>}, {transform_indices = @transform_3, window_bounds = array<i64: 32, 128>}, {transform_indices = @transform_4, window_bounds = array<i64: 1, 128>}, {transform_indices = @transform_5, window_bounds = array<i64: 16, 128>}]} {
    %c0 = arith.constant 0 : index
    %c0_0 = arith.constant 0 : index
    %0 = vector.load %arg2[%c0, %c0_0] : memref<16x32xf32, #tpu.memory_space<vmem>>, vector<16x32xf32>
    %cst = arith.constant dense<0.000000e+00> : vector<16xf32>
    %1 = vector.multi_reduction <add>, %0, %cst [1] : vector<16x32xf32> to vector<16xf32>
    %2 = vector.shape_cast %1 : vector<16xf32> to vector<16x1xf32>
    %cst_1 = arith.constant 3.200000e+01 : f32
    %3 = vector.broadcast %cst_1 : f32 to vector<16x1xf32>
    %4 = arith.divf %2, %3 : vector<16x1xf32>
    %5 = vector.broadcast %4 : vector<16x1xf32> to vector<16x32xf32>
    %6 = arith.subf %0, %5 : vector<16x32xf32>
    %7 = arith.mulf %6, %6 : vector<16x32xf32>
    %cst_2 = arith.constant dense<0.000000e+00> : vector<16xf32>
    %8 = vector.multi_reduction <add>, %7, %cst_2 [1] : vector<16x32xf32> to vector<16xf32>
    %9 = vector.shape_cast %8 : vector<16xf32> to vector<16x1xf32>
    %cst_3 = arith.constant 3.200000e+01 : f32
    %10 = vector.broadcast %cst_3 : f32 to vector<16x1xf32>
    %11 = arith.divf %9, %10 : vector<16x1xf32>
    %12 = vector.broadcast %4 : vector<16x1xf32> to vector<16x32xf32>
    %13 = arith.subf %0, %12 : vector<16x32xf32>
    %cst_4 = arith.constant 9.99999974E-6 : f32
    %14 = vector.broadcast %cst_4 : f32 to vector<16x1xf32>
    %15 = arith.addf %11, %14 : vector<16x1xf32>
    %16 = math.rsqrt %15 : vector<16x1xf32>
    %17 = vector.broadcast %16 : vector<16x1xf32> to vector<16x32xf32>
    %18 = arith.mulf %13, %17 : vector<16x32xf32>
    %c0_5 = arith.constant 0 : index
    %c0_6 = arith.constant 0 : index
    %19 = vector.load %arg3[%c0_5, %c0_6] : memref<1x32xf32, #tpu.memory_space<vmem>>, vector<1x32xf32>
    %20 = vector.broadcast %19 : vector<1x32xf32> to vector<16x32xf32>
    %21 = arith.mulf %18, %20 : vector<16x32xf32>
    %c0_7 = arith.constant 0 : index
    %c0_8 = arith.constant 0 : index
    %22 = vector.load %arg4[%c0_7, %c0_8] : memref<1x32xf32, #tpu.memory_space<vmem>>, vector<1x32xf32>
    %23 = vector.broadcast %22 : vector<1x32xf32> to vector<16x32xf32>
    %24 = arith.addf %21, %23 : vector<16x32xf32>
    %25 = arith.truncf %24 : vector<16x32xf32> to vector<16x32xbf16>
    %c0_9 = arith.constant 0 : index
    %c0_10 = arith.constant 0 : index
    %26 = vector.load %arg5[%c0_9, %c0_10] : memref<32x128xbf16, #tpu.memory_space<vmem>>, vector<32x128xbf16>
    %cst_11 = arith.constant dense<0.000000e+00> : vector<16x128xf32>
    %27 = tpu.matmul %25, %26, %cst_11 {dimension_numbers = #tpu.dot_dimension_numbers<[1], [0], [0], [1], [0, 0, 1, 1], [], []>} : vector<16x32xbf16>, vector<32x128xbf16>, vector<16x128xf32> -> vector<16x128xf32>
    %c0_12 = arith.constant 0 : index
    %c0_13 = arith.constant 0 : index
    %28 = vector.load %arg6[%c0_12, %c0_13] : memref<1x128xf32, #tpu.memory_space<vmem>>, vector<1x128xf32>
    %29 = vector.broadcast %28 : vector<1x128xf32> to vector<16x128xf32>
    %30 = arith.addf %27, %29 : vector<16x128xf32>
    %cst_14 = arith.constant 5.000000e-01 : f32
    %31 = vector.broadcast %cst_14 : f32 to vector<16x128xf32>
    %32 = arith.mulf %31, %30 : vector<16x128xf32>
    %cst_15 = arith.constant 0.707106769 : f32
    %33 = vector.broadcast %cst_15 : f32 to vector<16x128xf32>
    %34 = arith.mulf %30, %33 : vector<16x128xf32>
    %cst_16 = arith.constant 0.000000e+00 : f32
    %35 = vector.broadcast %cst_16 : f32 to vector<16x128xf32>
    %36 = arith.cmpf olt, %34, %35 : vector<16x128xf32>
    %cst_17 = arith.constant -1.000000e+00 : f32
    %cst_18 = arith.constant 1.000000e+00 : f32
    %37 = vector.broadcast %cst_17 : f32 to vector<16x128xf32>
    %38 = vector.broadcast %cst_18 : f32 to vector<16x128xf32>
    %39 = arith.select %36, %37, %38 : vector<16x128xi1>, vector<16x128xf32>
    %40 = math.absf %34 : vector<16x128xf32>
    %cst_19 = arith.constant 0.327591091 : f32
    %41 = vector.broadcast %cst_19 : f32 to vector<16x128xf32>
    %42 = arith.mulf %41, %40 : vector<16x128xf32>
    %cst_20 = arith.constant 1.000000e+00 : f32
    %43 = vector.broadcast %cst_20 : f32 to vector<16x128xf32>
    %44 = arith.addf %43, %42 : vector<16x128xf32>
    %cst_21 = arith.constant 1.000000e+00 : f32
    %45 = vector.broadcast %cst_21 : f32 to vector<16x128xf32>
    %46 = arith.divf %45, %44 : vector<16x128xf32>
    %cst_22 = arith.constant 1.06140542 : f32
    %47 = vector.broadcast %cst_22 : f32 to vector<16x128xf32>
    %48 = arith.mulf %47, %46 : vector<16x128xf32>
    %cst_23 = arith.constant -1.45315206 : f32
    %49 = vector.broadcast %cst_23 : f32 to vector<16x128xf32>
    %50 = arith.addf %48, %49 : vector<16x128xf32>
    %51 = arith.mulf %50, %46 : vector<16x128xf32>
    %cst_24 = arith.constant 1.42141378 : f32
    %52 = vector.broadcast %cst_24 : f32 to vector<16x128xf32>
    %53 = arith.addf %51, %52 : vector<16x128xf32>
    %54 = arith.mulf %53, %46 : vector<16x128xf32>
    %cst_25 = arith.constant -0.284496725 : f32
    %55 = vector.broadcast %cst_25 : f32 to vector<16x128xf32>
    %56 = arith.addf %54, %55 : vector<16x128xf32>
    %57 = arith.mulf %56, %46 : vector<16x128xf32>
    %cst_26 = arith.constant 0.254829586 : f32
    %58 = vector.broadcast %cst_26 : f32 to vector<16x128xf32>
    %59 = arith.addf %57, %58 : vector<16x128xf32>
    %60 = arith.mulf %59, %46 : vector<16x128xf32>
    %cst_27 = arith.constant 0.000000e+00 : f32
    %61 = vector.broadcast %cst_27 : f32 to vector<16x128xf32>
    %62 = arith.subf %61, %40 : vector<16x128xf32>
    %63 = arith.mulf %62, %40 : vector<16x128xf32>
    %64 = math.exp %63 : vector<16x128xf32>
    %65 = arith.mulf %60, %64 : vector<16x128xf32>
    %cst_28 = arith.constant 1.000000e+00 : f32
    %66 = vector.broadcast %cst_28 : f32 to vector<16x128xf32>
    %67 = arith.subf %66, %65 : vector<16x128xf32>
    %68 = arith.mulf %39, %67 : vector<16x128xf32>
    %cst_29 = arith.constant 1.000000e+00 : f32
    %69 = vector.broadcast %cst_29 : f32 to vector<16x128xf32>
    %70 = arith.addf %69, %68 : vector<16x128xf32>
    %71 = arith.mulf %32, %70 : vector<16x128xf32>
    %72 = arith.truncf %71 : vector<16x128xf32> to vector<16x128xbf16>
    %c0_30 = arith.constant 0 : index
    %c0_31 = arith.constant 0 : index
    %73 = vector.load %arg7[%c0_30, %c0_31] : memref<16x128xbf16, #tpu.memory_space<vmem>>, vector<16x128xbf16>
    tpu.vector_store %arg7[%c0_30, %c0_31], %72 {strides = array<i32>} : memref<16x128xbf16, #tpu.memory_space<vmem>>, vector<16x128xbf16>,
    return
  }
  func.func @transform_0(%arg0: i32, %arg1: i32) -> (i32, i32) {
    %c0_i32 = arith.constant 0 : i32
    %c0_i32_0 = arith.constant 0 : i32
    return %arg0, %c0_i32 : i32, i32
  }
  func.func @transform_1(%arg0: i32, %arg1: i32) -> (i32, i32) {
    %c0_i32 = arith.constant 0 : i32
    %c0_i32_0 = arith.constant 0 : i32
    %c0_i32_1 = arith.constant 0 : i32
    return %c0_i32, %c0_i32_0 : i32, i32
  }
  func.func @transform_2(%arg0: i32, %arg1: i32) -> (i32, i32) {
    %c0_i32 = arith.constant 0 : i32
    %c0_i32_0 = arith.constant 0 : i32
    %c0_i32_1 = arith.constant 0 : i32
    return %c0_i32, %c0_i32_0 : i32, i32
  }
  func.func @transform_3(%arg0: i32, %arg1: i32) -> (i32, i32) {
    %c0_i32 = arith.constant 0 : i32
    %c0_i32_0 = arith.constant 0 : i32
    return %c0_i32, %arg1 : i32, i32
  }
  func.func @transform_4(%arg0: i32, %arg1: i32) -> (i32, i32) {
    %c0_i32 = arith.constant 0 : i32
    %c0_i32_0 = arith.constant 0 : i32
    return %c0_i32, %arg1 : i32, i32
  }
  func.func @transform_5(%arg0: i32, %arg1: i32) -> (i32, i32) {
    %c0_i32 = arith.constant 0 : i32
    return %arg0, %arg1 : i32, i32
  }
}

module attributes {stable_mosaic.version = 11 : i64} {
  func.func @kernel(%arg0: i32, %arg1: i32, %arg2: i32, %arg3: memref<16x128xbf16, #tpu.memory_space<vmem>>, %arg4: memref<128x32xbf16, #tpu.memory_space<vmem>>, %arg5: memref<1x32xf32, #tpu.memory_space<vmem>>, %arg6: memref<16x32xf32, #tpu.memory_space<vmem>>, %arg7: memref<16x32xf32, #tpu.memory_space<vmem>>, %arg8: memref<16x32xf32, #tpu.memory_space<vmem>>) attributes {dimension_semantics = [#tpu.dimension_semantics<parallel>, #tpu.dimension_semantics<parallel>, #tpu.dimension_semantics<arbitrary>], iteration_bounds = array<i64: 1, 1, 1>, scalar_prefetch = 0 : i64, scratch_operands = 1 : i64, tpu.core_type = #tpu.core_type<tc>, window_params = [{transform_indices = @transform_0, window_bounds = array<i64: 16, 128>}, {transform_indices = @transform_1, window_bounds = array<i64: 128, 32>}, {transform_indices = @transform_2, window_bounds = array<i64: 1, 32>}, {transform_indices = @transform_3, window_bounds = array<i64: 16, 32>}, {transform_indices = @transform_4, window_bounds = array<i64: 16, 32>}]} {
    %c0_i32 = arith.constant 0 : i32
    %0 = arith.cmpi eq, %arg2, %c0_i32 : i32
    %1 = arith.extui %0 : i1 to i32
    %c0_i32_0 = arith.constant 0 : i32
    %2 = arith.cmpi ne, %1, %c0_i32_0 : i32
    scf.if %2 {
      %cst_10 = arith.constant 0.000000e+00 : f32
      %12 = vector.broadcast %cst_10 : f32 to vector<16x32xf32>
      %c0_11 = arith.constant 0 : index
      %c0_12 = arith.constant 0 : index
      %13 = vector.load %arg8[%c0_11, %c0_12] : memref<16x32xf32, #tpu.memory_space<vmem>>, vector<16x32xf32>
      tpu.vector_store %arg8[%c0_11, %c0_12], %12 {strides = array<i32>} : memref<16x32xf32, #tpu.memory_space<vmem>>, vector<16x32xf32>,
    } else {
    }
    %c0 = arith.constant 0 : index
    %c0_1 = arith.constant 0 : index
    %3 = vector.load %arg8[%c0, %c0_1] : memref<16x32xf32, #tpu.memory_space<vmem>>, vector<16x32xf32>
    %c0_2 = arith.constant 0 : index
    %c0_3 = arith.constant 0 : index
    %4 = vector.load %arg3[%c0_2, %c0_3] : memref<16x128xbf16, #tpu.memory_space<vmem>>, vector<16x128xbf16>
    %c0_4 = arith.constant 0 : index
    %c0_5 = arith.constant 0 : index
    %5 = vector.load %arg4[%c0_4, %c0_5] : memref<128x32xbf16, #tpu.memory_space<vmem>>, vector<128x32xbf16>
    %cst = arith.constant dense<0.000000e+00> : vector<16x32xf32>
    %6 = tpu.matmul %4, %5, %cst {dimension_numbers = #tpu.dot_dimension_numbers<[1], [0], [0], [1], [0, 0, 1, 1], [], []>} : vector<16x128xbf16>, vector<128x32xbf16>, vector<16x32xf32> -> vector<16x32xf32>
    %7 = arith.addf %3, %6 : vector<16x32xf32>
    %c0_6 = arith.constant 0 : index
    %c0_7 = arith.constant 0 : index
    %8 = vector.load %arg8[%c0_6, %c0_7] : memref<16x32xf32, #tpu.memory_space<vmem>>, vector<16x32xf32>
    tpu.vector_store %arg8[%c0_6, %c0_7], %7 {strides = array<i32>} : memref<16x32xf32, #tpu.memory_space<vmem>>, vector<16x32xf32>,
    %c0_i32_8 = arith.constant 0 : i32
    %9 = arith.cmpi eq, %arg2, %c0_i32_8 : i32
    %10 = arith.extui %9 : i1 to i32
    %c0_i32_9 = arith.constant 0 : i32
    %11 = arith.cmpi ne, %10, %c0_i32_9 : i32
    scf.if %11 {
      %c0_10 = arith.constant 0 : index
      %c0_11 = arith.constant 0 : index
      %12 = vector.load %arg8[%c0_10, %c0_11] : memref<16x32xf32, #tpu.memory_space<vmem>>, vector<16x32xf32>
      %c0_12 = arith.constant 0 : index
      %c0_13 = arith.constant 0 : index
      %13 = vector.load %arg5[%c0_12, %c0_13] : memref<1x32xf32, #tpu.memory_space<vmem>>, vector<1x32xf32>
      %14 = vector.broadcast %13 : vector<1x32xf32> to vector<16x32xf32>
      %15 = arith.addf %12, %14 : vector<16x32xf32>
      %c0_14 = arith.constant 0 : index
      %c0_15 = arith.constant 0 : index
      %16 = vector.load %arg6[%c0_14, %c0_15] : memref<16x32xf32, #tpu.memory_space<vmem>>, vector<16x32xf32>
      %17 = arith.addf %15, %16 : vector<16x32xf32>
      %c0_16 = arith.constant 0 : index
      %c0_17 = arith.constant 0 : index
      %18 = vector.load %arg7[%c0_16, %c0_17] : memref<16x32xf32, #tpu.memory_space<vmem>>, vector<16x32xf32>
      tpu.vector_store %arg7[%c0_16, %c0_17], %17 {strides = array<i32>} : memref<16x32xf32, #tpu.memory_space<vmem>>, vector<16x32xf32>,
    } else {
    }
    return
  }
  func.func @transform_0(%arg0: i32, %arg1: i32, %arg2: i32) -> (i32, i32) {
    %c0_i32 = arith.constant 0 : i32
    return %arg0, %arg2 : i32, i32
  }
  func.func @transform_1(%arg0: i32, %arg1: i32, %arg2: i32) -> (i32, i32) {
    %c0_i32 = arith.constant 0 : i32
    return %arg2, %arg1 : i32, i32
  }
  func.func @transform_2(%arg0: i32, %arg1: i32, %arg2: i32) -> (i32, i32) {
    %c0_i32 = arith.constant 0 : i32
    %c0_i32_0 = arith.constant 0 : i32
    return %c0_i32, %arg1 : i32, i32
  }
  func.func @transform_3(%arg0: i32, %arg1: i32, %arg2: i32) -> (i32, i32) {
    %c0_i32 = arith.constant 0 : i32
    return %arg0, %arg1 : i32, i32
  }
  func.func @transform_4(%arg0: i32, %arg1: i32, %arg2: i32) -> (i32, i32) {
    %c0_i32 = arith.constant 0 : i32
    return %arg0, %arg1 : i32, i32
  }
}

module attributes {stable_mosaic.version = 11 : i64} {
  func.func @kernel(%arg0: i32, %arg1: i32, %arg2: memref<16x32xf32, #tpu.memory_space<vmem>>, %arg3: memref<1x32xf32, #tpu.memory_space<vmem>>, %arg4: memref<1x32xf32, #tpu.memory_space<vmem>>, %arg5: memref<32x64xbf16, #tpu.memory_space<vmem>>, %arg6: memref<16x64xf32, #tpu.memory_space<vmem>>) attributes {dimension_semantics = [#tpu.dimension_semantics<parallel>, #tpu.dimension_semantics<parallel>], iteration_bounds = array<i64: 1, 1>, scalar_prefetch = 0 : i64, scratch_operands = 0 : i64, tpu.core_type = #tpu.core_type<tc>, window_params = [{transform_indices = @transform_0, window_bounds = array<i64: 16, 32>}, {pipeline_mode = #tpu.pipeline_mode<synchronous>, transform_indices = @transform_1, window_bounds = array<i64: 1, 32>}, {pipeline_mode = #tpu.pipeline_mode<synchronous>, transform_indices = @transform_2, window_bounds = array<i64: 1, 32>}, {transform_indices = @transform_3, window_bounds = array<i64: 32, 64>}, {transform_indices = @transform_4, window_bounds = array<i64: 16, 64>}]} {
    %c0 = arith.constant 0 : index
    %c0_0 = arith.constant 0 : index
    %0 = vector.load %arg2[%c0, %c0_0] : memref<16x32xf32, #tpu.memory_space<vmem>>, vector<16x32xf32>
    %cst = arith.constant dense<0.000000e+00> : vector<16xf32>
    %1 = vector.multi_reduction <add>, %0, %cst [1] : vector<16x32xf32> to vector<16xf32>
    %2 = vector.shape_cast %1 : vector<16xf32> to vector<16x1xf32>
    %cst_1 = arith.constant 3.200000e+01 : f32
    %3 = vector.broadcast %cst_1 : f32 to vector<16x1xf32>
    %4 = arith.divf %2, %3 : vector<16x1xf32>
    %5 = vector.broadcast %4 : vector<16x1xf32> to vector<16x32xf32>
    %6 = arith.subf %0, %5 : vector<16x32xf32>
    %7 = arith.mulf %6, %6 : vector<16x32xf32>
    %cst_2 = arith.constant dense<0.000000e+00> : vector<16xf32>
    %8 = vector.multi_reduction <add>, %7, %cst_2 [1] : vector<16x32xf32> to vector<16xf32>
    %9 = vector.shape_cast %8 : vector<16xf32> to vector<16x1xf32>
    %cst_3 = arith.constant 3.200000e+01 : f32
    %10 = vector.broadcast %cst_3 : f32 to vector<16x1xf32>
    %11 = arith.divf %9, %10 : vector<16x1xf32>
    %12 = vector.broadcast %4 : vector<16x1xf32> to vector<16x32xf32>
    %13 = arith.subf %0, %12 : vector<16x32xf32>
    %cst_4 = arith.constant 9.99999974E-6 : f32
    %14 = vector.broadcast %cst_4 : f32 to vector<16x1xf32>
    %15 = arith.addf %11, %14 : vector<16x1xf32>
    %16 = math.rsqrt %15 : vector<16x1xf32>
    %17 = vector.broadcast %16 : vector<16x1xf32> to vector<16x32xf32>
    %18 = arith.mulf %13, %17 : vector<16x32xf32>
    %c0_5 = arith.constant 0 : index
    %c0_6 = arith.constant 0 : index
    %19 = vector.load %arg3[%c0_5, %c0_6] : memref<1x32xf32, #tpu.memory_space<vmem>>, vector<1x32xf32>
    %20 = vector.broadcast %19 : vector<1x32xf32> to vector<16x32xf32>
    %21 = arith.mulf %18, %20 : vector<16x32xf32>
    %c0_7 = arith.constant 0 : index
    %c0_8 = arith.constant 0 : index
    %22 = vector.load %arg4[%c0_7, %c0_8] : memref<1x32xf32, #tpu.memory_space<vmem>>, vector<1x32xf32>
    %23 = vector.broadcast %22 : vector<1x32xf32> to vector<16x32xf32>
    %24 = arith.addf %21, %23 : vector<16x32xf32>
    %25 = arith.truncf %24 : vector<16x32xf32> to vector<16x32xbf16>
    %c0_9 = arith.constant 0 : index
    %c0_10 = arith.constant 0 : index
    %26 = vector.load %arg5[%c0_9, %c0_10] : memref<32x64xbf16, #tpu.memory_space<vmem>>, vector<32x64xbf16>
    %cst_11 = arith.constant dense<0.000000e+00> : vector<16x64xf32>
    %27 = tpu.matmul %25, %26, %cst_11 {dimension_numbers = #tpu.dot_dimension_numbers<[1], [0], [0], [1], [0, 0, 1, 1], [], []>} : vector<16x32xbf16>, vector<32x64xbf16>, vector<16x64xf32> -> vector<16x64xf32>
    %c0_12 = arith.constant 0 : index
    %c0_13 = arith.constant 0 : index
    %28 = vector.load %arg6[%c0_12, %c0_13] : memref<16x64xf32, #tpu.memory_space<vmem>>, vector<16x64xf32>
    tpu.vector_store %arg6[%c0_12, %c0_13], %27 {strides = array<i32>} : memref<16x64xf32, #tpu.memory_space<vmem>>, vector<16x64xf32>,
    return
  }
  func.func @transform_0(%arg0: i32, %arg1: i32) -> (i32, i32) {
    %c0_i32 = arith.constant 0 : i32
    %c0_i32_0 = arith.constant 0 : i32
    return %arg0, %c0_i32 : i32, i32
  }
  func.func @transform_1(%arg0: i32, %arg1: i32) -> (i32, i32) {
    %c0_i32 = arith.constant 0 : i32
    %c0_i32_0 = arith.constant 0 : i32
    %c0_i32_1 = arith.constant 0 : i32
    return %c0_i32, %c0_i32_0 : i32, i32
  }
  func.func @transform_2(%arg0: i32, %arg1: i32) -> (i32, i32) {
    %c0_i32 = arith.constant 0 : i32
    %c0_i32_0 = arith.constant 0 : i32
    %c0_i32_1 = arith.constant 0 : i32
    return %c0_i32, %c0_i32_0 : i32, i32
  }
  func.func @transform_3(%arg0: i32, %arg1: i32) -> (i32, i32) {
    %c0_i32 = arith.constant 0 : i32
    %c0_i32_0 = arith.constant 0 : i32
    return %c0_i32, %arg1 : i32, i32
  }
  func.func @transform_4(%arg0: i32, %arg1: i32) -> (i32, i32) {
    %c0_i32 = arith.constant 0 : i32
    return %arg0, %arg1 : i32, i32
  }
}

</mosaic_0001>

<bundles_post_ra>
// kernel: _lambda_.13
= control target key start
LH: loop header
LB: loop body
LE: loop exit
PB: predicated region body
PF: predicated region fallthrough
CT: control target
= control target key end

     0   :  { %vm22_vm0 = vcmask 261120   ;;  %v144_v0 = vmov 0.0   ;;  %vm145_vm1 = vmmov 0   ;;  %s202_s1 = inlined_call_operand.vmem [shape: bf16[32,32], index: 1, kind: input, shape index: {}]   ;;  %s203_s0 = inlined_call_operand.vmem [shape: bf16[16,32], index: 0, kind: input, shape index: {}]   ;;  %s204_s2 = inlined_call_operand.vmem [shape: f32[1,32], index: 2, kind: input, shape index: {}]   ;;  %s205_s3 = inlined_call_operand.vmem [shape: f32[16,32], index: 3, kind: input, shape index: {}]   ;;  %s206_s4 = inlined_call_operand.vmem [shape: f32[16,32], index: 4, kind: output, shape index: {}]  }
   0x1   :  { %131 = vmatprep.subr.bf16.mxu0 %v144_v0  ;;  %v141_v1 = vld [vmem:[%s202_s1] sm:$0xff]   ;;  %135 = vmatprep.mubr.msk.bf16.mxu0 %vm145_vm1, %v144_v0  ;;  %23 = vst.msk [vmem:[#allocation2] sm:$0xff] %vm22_vm0, %v144_v0  ;;  %24 = vst.msk [vmem:[#allocation2 + $0x8] sm:$0xff] %vm22_vm0, %v144_v0  ;;  %v142_v2 = vld [vmem:[%s202_s1 + $0x8] sm:$0xff]  }
   0x2   :  { %132 = vmatpush3.bf16.msra.mxu0 %v141_v1  ;;  %v143_v3 = vld [vmem:[%s203_s0] sm:$0xff]   ;;  %v114_v17 = vld [vmem:[%s205_s3 + $0x8] sm:$0xff] }
   0x3   :  { %133 = vmatprep.subr.bf16.mxu0 %v144_v0  ;;  %v127_v12 = vld [vmem:[%s204_s2] ss:$0 sm:$0xff] }
   0x4   :  { %v113_v14 = vld [vmem:[%s205_s3] sm:$0xff] }
   0x6   :  { %134 = vmatpush3.bf16.msra.mxu0 %v142_v2 }
   0x8   :  { %v25_v4 = vld [vmem:[#allocation2] sm:$0xff]  ;;  %v26_v6 = vld [vmem:[#allocation2 + $0x8] sm:$0xff] }
   0x9   :  { %136 = vmatmul.mubr.msk.bf16.vlgmr.msra.gmra.mrb[0].mxu0 %vm22_vm0, %v143_v3 }
  0xdc   :  { %v88_v5 = vpop.f32.mrb[0].mxu0 }
  0xdd   :  { %v95_v7 = vadd.f32 %v88_v5, %v25_v4  ;;  %v137_v8 = vpop.f32.mrb[1].mxu0 }
  0xde   :  { %v91_v9 = vpop.f32.mrb[2].mxu0 }
  0xdf   :  { %97 = vst.msk [vmem:[#allocation2] sm:$0xff] %vm22_vm0, %v95_v7  ;;  %v96_v10 = vadd.f32 %v91_v9, %v26_v6  ;;  %v138_v11 = vpop.f32.mrb[3].mxu0 }
  0xe1   :  { %98 = vst.msk [vmem:[#allocation2 + $0x8] sm:$0xff] %vm22_vm0, %v96_v10 }
  0xe6   :  { %v102_v13 = vld [vmem:[#allocation2] sm:$0xff] }
  0xe7   :  { %v111_v15 = vadd.f32 %v127_v12, %v102_v13 }
  0xe8   :  { %v103_v16 = vld [vmem:[#allocation2 + $0x8] sm:$0xff] }
  0xe9   :  { %v115_v18 = vadd.f32 %v113_v14, %v111_v15  ;;  %v112_v19 = vadd.f32 %v127_v12, %v103_v16 }
  0xeb   :  { %117 = vst.msk [vmem:[%s206_s4] sm:$0xff] %vm22_vm0, %v115_v18  ;;  %v116_v20 = vadd.f32 %v114_v17, %v112_v19 }
  0xed   :  { %118 = vst.msk [vmem:[%s206_s4 + $0x8] sm:$0xff] %vm22_vm0, %v116_v20 }

// kernel: _lambda_.12
= control target key start
LH: loop header
LB: loop body
LE: loop exit
PB: predicated region body
PF: predicated region fallthrough
CT: control target
= control target key end

     0   :  { %s872_s12 = smov 0   ;;  %s874_s13 = smov 0   ;;  %s980_s0 = inlined_call_operand.vmem [shape: bf16[2,4,8,8], index: 0, kind: input, shape index: {}]   ;;  %s981_s1 = inlined_call_operand.vmem [shape: bf16[2,2,8,8], index: 1, kind: input, shape index: {}]   ;;  %s982_s2 = inlined_call_operand.vmem [shape: bf16[2,2,8,8], index: 2, kind: input, shape index: {}]   ;;  %s983_s3 = inlined_call_operand.vmem [shape: bf16[2,4,8,8], index: 3, kind: output, shape index: {}]  }
   0x1   :  { %s876_s14 = smov 0   ;;  %s878_s15 = smov 0  }
   0x2   :  { %s880_s16 = smov 0   ;;  %s882_s17 = smov 0  }
   0x3   :  { %s884_s18 = smov 0  }
   0x4 LB: > { %s38_s19 = sadd.s32 1, %s834_s15  ;;  %s42_s20 = sadd.s32 1, %s838_s16  ;;  %s846_s18 = sphi %s884_s18, %s13_s18   ;;  %s842_s17 = sphi %s882_s17, %s989_s17   ;;  %s838_s16 = sphi %s880_s16, %s988_s16   ;;  %s834_s15 = sphi %s878_s15, %s987_s15   ;;  %s830_s14 = sphi %s876_s14, %s986_s14   ;;  %s826_s13 = sphi %s874_s13, %s985_s13   ;;  %s822_s12 = sphi %s872_s12, %s984_s12  }
   0x5   : > { %p40_p0 = scmp.ge.s32.totalorder %s38_s19, 2  ;;  %p693_p1 = scmp.ge.s32.totalorder %s846_s18, 1 }
   0x6   : > { %p236_p2 = scmp.lt.s32.totalorder %s846_s18, 9  ;;  %s46_s21 = sadd.s32 1, %s842_s17 }
   0x7   : > { %s991_s19 = smov (%p40_p0, %s38_s19), 0  ;;  %s993_s20 = smov (!%p40_p0, %s42_s20), %s838_s16 }
   0x8   : > { %p237_p3 = pnand %p693_p1, %p236_p2  ;;  %p44_p4 = scmp.ge.s32.totalorder %s993_s20, 2 }
   0x9   : > { %p300_p6 = scmp.lt.s32.totalorder (!%p237_p3), %s830_s14, 1  ;;  %p315_p7 = scmp.lt.s32.totalorder (!%p237_p3), %s826_s13, 1  ;;  %vm358_vm0 = vcmask (!%p237_p3), 64512   ;;  %v848_v0 = vmov (!%p237_p3), 0.0   ;;  %vm849_vm1 = vmmov (!%p237_p3), 0   ;;  %vm355_vm2 = vcmask (!%p237_p3), 7168  }
   0xa   : > { %s995_s20 = smov (%p44_p4, %s993_s20), 0  ;;  %s997_s21 = smov (!%p44_p4, %s46_s21), %s842_s17 }
   0xb   : > { %p48_p5 = scmp.ge.s32.totalorder %s997_s21, 2  ;;  %240 = sbr.rel (%p237_p3) target bundleno = 832 (0x340), region = 32  ;;  %712 = vmatprep.subr.bf16.mxu0 (!%p237_p3), %v848_v0  ;;  %359 = vst.msk [vmem:[#allocation4] sm:$0xff] (!%p237_p3), %vm358_vm0, %v848_v0  ;;  %714 = vmatprep.mubr.msk.bf16.mxu0 (!%p237_p3), %vm849_vm1, %v848_v0  ;;  %v850_v4 = vmov (!%p237_p3), -1e+30   ;;  %v418_v5 = vlaneseq (!%p237_p3)  ;;  %v851_v15 = vmov (!%p237_p3), 0  }
   0xc   : > { %s694_s22 = sshll.u32 (!%p237_p3), %s826_s13, 1  ;;  %718 = vmatprep.subr.bf16.mxu1 (!%p237_p3), %v848_v0  ;;  %720 = vmatprep.mubr.msk.bf16.mxu1 (!%p237_p3), %vm849_vm1, %v848_v0  ;;  %356 = vst.msk [vmem:[#allocation2] sm:$0xff] (!%p237_p3), %vm355_vm2, %v850_v4  ;;  %357 = vst.msk [vmem:[#allocation3] sm:$0xff] (!%p237_p3), %vm355_vm2, %v848_v0  ;;  %vm463_vm4 = vcmask (!%p237_p3), 1043456   ;;  %vm523_vm5 = vcmask (!%p237_p3), 60416  }
   0xd   : > { %s999_s21 = smov (%p48_p5, %s997_s21), 0  ;;  %s299_s24 = sadd.s32 (!%p237_p3), %s822_s12, %s694_s22  ;;  %v419_v6 = vshrl.u32 (!%p237_p3), %v418_v5, 7  ;;  %v423_v7 = vand.u32 (!%p237_p3), 127, %v418_v5  ;;  %784 = vset.pattern.permute.xlu0 (!%p237_p3), %v851_v15  ;;  %785 = vset.pattern.permute.xlu1 (!%p237_p3), %v851_v15 }
   0xe   : > { %p302_p8 = scmp.lt.s32.totalorder (!%p237_p3), %s299_s24, 3 }
   0xf   : > { %vm426_vm3 = vcmp.le.s32.totalorder (!%p237_p3), %v423_v7, %v419_v6 }
  0x12   : > { %s1001_s14 = smov (!%p300_p6, %s830_s14), 1  ;;  %s1003_s13 = smov (!%p315_p7, %s826_s13), 1  ;;  %v452_v36 = vld [vmem:[#allocation4] sm:$0xff] }
  0x13   : > { %s697_s23 = sshll.u32 %s1001_s14, 1  ;;  %s695_s30 = sshll.u32 %s1001_s14, 2  ;;  %v428_v16 = vld [vmem:[#allocation2] sm:$0xff]  ;;  %v444_v30 = vld [vmem:[#allocation3] sm:$0xff] }
  0x14   : > { %s923_s25 = sadd.s32 %s697_s23, %s1003_s13  ;;  %s1005_s24 = smov (!%p302_p8, %s299_s24), 3 }
  0x15   : > { %s698_s26 = sshll.u32 %s923_s25, 2  ;;  %s932_s4 = sadd.s32 %s695_s30, %s1005_s24 }
  0x16   : > { %s323_s29 = scalar_lea.vmem %s981_s1, %s698_s26  ;;  %s696_s5 = sshll.u32 %s932_s4, 2 }
  0x17   : > { %v368_v1 = vld [vmem:[%s323_s29] sm:$0xf]  ;;  %s310_s8 = scalar_lea.vmem %s980_s0, %s696_s5  ;;  %s334_s11 = scalar_lea.vmem %s982_s2, %s698_s26 }
  0x18   : > { %v375_v2 = vsel %vm358_vm0, %v368_v1, 0  ;;  %v367_v3 = vld [vmem:[%s310_s8] sm:$0xf]  ;;  %s347_s14 = scalar_lea.vmem %s983_s3, %s696_s5 }
  0x19   : > { %713 = vmatpush3.bf16.xpose.msra.mxu0 %v375_v2  ;;  %v369_v20 = vld [vmem:[%s334_s11] sm:$0xf] }
  0x1a   : > { %v465_v21 = vsel %vm463_vm4, %v369_v20, 0 }
  0x1b   : > { %719 = vmatpush3.bf16.msra.mxu1 %v465_v21 }
  0x20   : > { %715 = vmatmul.mubr.msk.bf16.vlgmr.msra.gmra.mrb[0].mxu0 %vm358_vm0, %v367_v3 }
  0xf3   : > { %v411_v8 = vpop.f32.mrb[0].mxu0 }
  0xf4   : > { %v417_v9 = vmul.f32 0.35355338, %v411_v8  ;;  %v716_v10 = vpop.f32.mrb[1].mxu0 }
  0xf5   : > { %v414_v11 = vpop.f32.mrb[2].mxu0 }
  0xf6   : > { %v717_v12 = vpop.f32.mrb[3].mxu0  ;;  %v427_v13 = vsel %vm426_vm3, %v417_v9, -1e+30 }
  0xf7   : > { %v429_v14 = vsel %vm358_vm0, %v427_v13, -inf }
  0xf8   : > { %430 = vmax.xlane.f32.xlu0 %v429_v14 }
 0x185   : > { %v431_v17 = vpop.xlane.xlu0 %430 }
 0x186   : > { %v432_v18 = vmax.f32 %v428_v16, %v431_v17 }
 0x188   : > { %v433_v19 = vsub.f32 %v428_v16, %v432_v18  ;;  %509 = vst.msk [vmem:[#allocation2] sm:$0xff] %vm355_vm2, %v432_v18  ;;  %438 = vperm.xlu0 %784, %v432_v18  }
 0x18a   : > { %v434_v28 = vmul.f32 1.442695, %v433_v19 }
 0x207   : > { %v439_v22 = vpop.permute.xlu0 %438 }
 0x208   : > { %v441_v23 = vsub.f32 %v427_v13, %v439_v22 }
 0x20a   : > { %v442_v24 = vmul.f32 1.442695, %v441_v23 }
 0x20c   : > { %786 = vpow2.f32 %v442_v24 }
 0x20d   : > { %788 = vpow2.f32 %v434_v28 }
 0x216   : > { %v787_v25 = vpop.eup %786 }
 0x217   : > { %v446_v26 = vsel %vm358_vm0, %v787_v25, 0.0  ;;  %v459_v27 = vpack.c.bf16 %v787_v25, %v787_v25  ;;  %v789_v29 = vpop.eup %788 }
 0x218   : > { %447 = vadd.xlane.f32.xlu1 %v446_v26  ;;  %v445_v31 = vmul.f32 %v789_v29, %v444_v30 }
 0x219   : > { %721 = vmatmul.mubr.msk.bf16.vlgmr.msra.gmra.mrb[0].mxu1 %vm358_vm0, %v459_v27 }
 0x229   : > { %455 = vperm.xlu1 %785, %v789_v29  }
 0x2a5   : > { %v448_v32 = vpop.xlane.xlu1 %447 }
 0x2a6   : > { %v449_v33 = vadd.f32 %v448_v32, %v445_v31 }
 0x2a8   : > { %451 = vst.msk [vmem:[#allocation3] sm:$0xff] %vm355_vm2, %v449_v33 }
 0x2a9   : > { %v456_v37 = vpop.permute.xlu1 %455 }
 0x2aa   : > { %v458_v38 = vmul.f32 %v456_v37, %v452_v36 }
 0x2af   : > { %v514_v34 = vld [vmem:[#allocation3] sm:$0xff] }
 0x2b0   : > { %790 = vrcp.f32 %v514_v34 }
 0x2ba   : > { %v791_v35 = vpop.eup %790 }
 0x2bb   : > { %518 = vperm.xlu1 %785, %v791_v35  }
 0x2ec   : > { %v501_v39 = vpop.f32.mrb[0].mxu1 }
 0x2ed   : > { %v507_v40 = vadd.f32 %v501_v39, %v458_v38  ;;  %v722_v41 = vpop.f32.mrb[1].mxu1 }
 0x2ee   : > { %v504_v42 = vpop.f32.mrb[2].mxu1 }
 0x2ef   : > { %508 = vst.msk [vmem:[#allocation4] sm:$0xff] %vm358_vm0, %v507_v40  ;;  %v723_v43 = vpop.f32.mrb[3].mxu1 }
 0x2f6   : > { %v513_v44 = vld [vmem:[#allocation4] sm:$0xff] }
 0x33a   : > { %v519_v45 = vpop.permute.xlu1 %518 }
 0x33b   : > { %v521_v46 = vmul.f32 %v519_v45, %v513_v44 }
 0x33d   : > { %v522_v47 = vpack.c.bf16 %v521_v46, %v521_v46 }
 0x33f   : > { %524 = vst.msk [vmem:[%s347_s14] sm:$0xf] %vm523_vm5, %v522_v47 }
 0x340 PF: > { %s13_s18 = sadd.s32 1, %s846_s18   ;;  %s984_s12 = smov %s834_s15 }
 0x341   : > { %p10_p9 = scmp.ge.s32.totalorder %s13_s18, 10   ;;  %s985_s13 = smov %s838_s16 }
 0x342   : > { %s986_s14 = smov %s842_s17  ;;  %s987_s15 = smov %s991_s19 }
 0x343   : > { %s988_s16 = smov %s995_s20  ;;  %s989_s17 = smov %s999_s21 }
 0x344   :  { %12 = sbr.rel (!%p10_p9) target bundleno = 4 (0x4), region = 80 }

// kernel: _lambda_.11
= control target key start
LH: loop header
LB: loop body
LE: loop exit
PB: predicated region body
PF: predicated region fallthrough
CT: control target
= control target key end

     0   :  { %vm20_vm0 = vcmask 261120   ;;  %v170_v15 = vmov 0.0   ;;  %vm171_vm1 = vmmov 0   ;;  %vm135_vm2 = vcmask 519168   ;;  %s226_s0 = inlined_call_operand.vmem [shape: f32[16,32], index: 0, kind: input, shape index: {}]   ;;  %s227_s3 = inlined_call_operand.vmem [shape: bf16[32,64], index: 3, kind: input, shape index: {}]   ;;  %s228_s1 = inlined_call_operand.vmem [shape: f32[1,32], index: 1, kind: input, shape index: {}]   ;;  %s229_s2 = inlined_call_operand.vmem [shape: f32[1,32], index: 2, kind: input, shape index: {}]   ;;  %s230_s4 = inlined_call_operand.vmem [shape: bf16[16,64], index: 4, kind: output, shape index: {}]  }
   0x1   :  { %v18_v0 = vld [vmem:[%s226_s0] sm:$0xff]  ;;  %v19_v1 = vld [vmem:[%s226_s0 + $0x8] sm:$0xff]  ;;  %154 = vmatprep.subr.bf16.mxu0 %v170_v15  ;;  %158 = vmatprep.mubr.msk.bf16.mxu0 %vm171_vm1, %v170_v15 }
   0x2   :  { %v21_v2 = vsel %vm20_vm0, %v18_v0, 0.0  ;;  %v24_v3 = vsel %vm20_vm0, %v19_v1, 0.0  ;;  %v164_v14 = vld [vmem:[%s227_s3] sm:$0xff]   ;;  %v165_v16 = vld [vmem:[%s227_s3 + $0x8] sm:$0xff]  }
   0x3   :  { %22 = vadd.xlane.f32.xlu0 %v21_v2  ;;  %155 = vmatpush3.bf16.msra.mxu0 %v164_v14  ;;  %v142_v25 = vld [vmem:[%s228_s1] ss:$0 sm:$0xff] }
   0x4   :  { %156 = vmatprep.subr.bf16.mxu0 %v170_v15  ;;  %v143_v29 = vld [vmem:[%s229_s2] ss:$0 sm:$0xff] }
   0x7   :  { %25 = vadd.xlane.f32.xlu0 %v24_v3  ;;  %157 = vmatpush3.bf16.msra.mxu0 %v165_v16 }
  0x90   :  { %v23_v4 = vpop.xlane.xlu0 %22 }
  0x91   :  { %v28_v5 = vmul.f32 0.03125, %v23_v4 }
  0x93   :  { %v30_v6 = vsub.f32 %v18_v0, %v28_v5 }
  0x94   :  { %v26_v7 = vpop.xlane.xlu0 %25 }
  0x95   :  { %v29_v8 = vmul.f32 0.03125, %v26_v7  ;;  %v32_v9 = vmul.f32 %v30_v6, %v30_v6 }
  0x97   :  { %v31_v10 = vsub.f32 %v19_v1, %v29_v8  ;;  %v34_v11 = vsel %vm20_vm0, %v32_v9, 0.0 }
  0x98   :  { %35 = vadd.xlane.f32.xlu1 %v34_v11 }
  0x99   :  { %v33_v12 = vmul.f32 %v31_v10, %v31_v10 }
  0x9b   :  { %v37_v13 = vsel %vm20_vm0, %v33_v12, 0.0 }
  0x9c   :  { %38 = vadd.xlane.f32.xlu1 %v37_v13 }
 0x125   :  { %v36_v17 = vpop.xlane.xlu1 %35 }
 0x126   :  { %v40_v18 = vmul.f32 0.03125, %v36_v17 }
 0x128   :  { %v42_v19 = vadd.f32 1e-05, %v40_v18 }
 0x129   :  { %v39_v20 = vpop.xlane.xlu1 %38 }
 0x12a   :  { %166 = vrsqrt.f32 %v42_v19  ;;  %v41_v21 = vmul.f32 0.03125, %v39_v20 }
 0x12c   :  { %v43_v22 = vadd.f32 1e-05, %v41_v21 }
 0x12e   :  { %168 = vrsqrt.f32 %v43_v22 }
 0x134   :  { %v167_v23 = vpop.eup %166 }
 0x135   :  { %v46_v24 = vmul.f32 %v167_v23, %v30_v6 }
 0x137   :  { %v55_v28 = vmul.f32 %v142_v25, %v46_v24 }
 0x138   :  { %v169_v26 = vpop.eup %168 }
 0x139   :  { %v47_v27 = vmul.f32 %v169_v26, %v31_v10  ;;  %v64_v31 = vadd.f32 %v143_v29, %v55_v28 }
 0x13b   :  { %v56_v30 = vmul.f32 %v142_v25, %v47_v27 }
 0x13d   :  { %v65_v32 = vadd.f32 %v143_v29, %v56_v30 }
 0x13f   :  { %v66_v33 = vpack.c.bf16 %v65_v32, %v64_v31 }
 0x141   :  { %159 = vmatmul.mubr.msk.bf16.vlgmr.msra.gmra.mrb[0].mxu0 %vm20_vm0, %v66_v33 }
 0x214   :  { %v120_v34 = vpop.f32.mrb[0].mxu0 }
 0x215   :  { %v149_v35 = vpack.c.bf16 %v120_v34, %v120_v34  ;;  %v160_v36 = vpop.f32.mrb[1].mxu0 }
 0x216   :  { %v123_v37 = vpop.f32.mrb[2].mxu0 }
 0x217   :  { %136 = vst.msk [vmem:[%s230_s4] sm:$0xf] %vm135_vm2, %v149_v35  ;;  %v150_v38 = vpack.c.bf16 %v123_v37, %v123_v37  ;;  %v161_v39 = vpop.f32.mrb[3].mxu0 }
 0x219   :  { %137 = vst.msk [vmem:[%s230_s4 + $0x4] sm:$0xf] %vm135_vm2, %v150_v38 }

// kernel: _lambda_.14
= control target key start
LH: loop header
LB: loop body
LE: loop exit
PB: predicated region body
PF: predicated region fallthrough
CT: control target
= control target key end

     0   :  { %vm23_vm0 = vcmask 261120   ;;  %v248_v15 = vmov 0.0   ;;  %vm249_vm1 = vmmov 0   ;;  %s310_s0 = inlined_call_operand.vmem [shape: f32[16,32], index: 0, kind: input, shape index: {}]   ;;  %s311_s3 = inlined_call_operand.vmem [shape: bf16[32,128], index: 3, kind: input, shape index: {}]   ;;  %s312_s1 = inlined_call_operand.vmem [shape: f32[1,32], index: 1, kind: input, shape index: {}]   ;;  %s313_s2 = inlined_call_operand.vmem [shape: f32[1,32], index: 2, kind: input, shape index: {}]   ;;  %s314_s4 = inlined_call_operand.vmem [shape: f32[1,128], index: 4, kind: input, shape index: {}]   ;;  %s315_s5 = inlined_call_operand.vmem [shape: bf16[16,128], index: 5, kind: output, shape index: {}]  }
   0x1   :  { %v21_v0 = vld [vmem:[%s310_s0] sm:$0xff]  ;;  %v22_v1 = vld [vmem:[%s310_s0 + $0x8] sm:$0xff]  ;;  %223 = vmatprep.subr.bf16.mxu0 %v248_v15  ;;  %227 = vmatprep.mubr.msk.bf16.mxu0 %vm249_vm1, %v248_v15 }
   0x2   :  { %v24_v2 = vsel %vm23_vm0, %v21_v0, 0.0  ;;  %v27_v3 = vsel %vm23_vm0, %v22_v1, 0.0  ;;  %v234_v14 = vld [vmem:[%s311_s3] sm:$0xff]   ;;  %v235_v16 = vld [vmem:[%s311_s3 + $0x8] sm:$0xff]  }
   0x3   :  { %25 = vadd.xlane.f32.xlu0 %v24_v2  ;;  %224 = vmatpush3.bf16.msra.mxu0 %v234_v14  ;;  %v205_v25 = vld [vmem:[%s312_s1] ss:$0 sm:$0xff] }
   0x4   :  { %225 = vmatprep.subr.bf16.mxu0 %v248_v15  ;;  %v206_v29 = vld [vmem:[%s313_s2] ss:$0 sm:$0xff]  ;;  %v250_v15 = vmov 1.0  }
   0x5   :  { %v207_v34 = vld [vmem:[%s314_s4] ss:$0 sm:$0xff] }
   0x7   :  { %28 = vadd.xlane.f32.xlu0 %v27_v3  ;;  %226 = vmatpush3.bf16.msra.mxu0 %v235_v16 }
  0x90   :  { %v26_v4 = vpop.xlane.xlu0 %25 }
  0x91   :  { %v31_v5 = vmul.f32 0.03125, %v26_v4 }
  0x93   :  { %v33_v6 = vsub.f32 %v21_v0, %v31_v5 }
  0x94   :  { %v29_v7 = vpop.xlane.xlu0 %28 }
  0x95   :  { %v32_v8 = vmul.f32 0.03125, %v29_v7  ;;  %v35_v9 = vmul.f32 %v33_v6, %v33_v6 }
  0x97   :  { %v34_v10 = vsub.f32 %v22_v1, %v32_v8  ;;  %v37_v11 = vsel %vm23_vm0, %v35_v9, 0.0 }
  0x98   :  { %38 = vadd.xlane.f32.xlu1 %v37_v11 }
  0x99   :  { %v36_v12 = vmul.f32 %v34_v10, %v34_v10 }
  0x9b   :  { %v40_v13 = vsel %vm23_vm0, %v36_v12, 0.0 }
  0x9c   :  { %41 = vadd.xlane.f32.xlu1 %v40_v13 }
 0x125   :  { %v39_v17 = vpop.xlane.xlu1 %38 }
 0x126   :  { %v43_v18 = vmul.f32 0.03125, %v39_v17 }
 0x128   :  { %v45_v19 = vadd.f32 1e-05, %v43_v18 }
 0x129   :  { %v42_v20 = vpop.xlane.xlu1 %41 }
 0x12a   :  { %236 = vrsqrt.f32 %v45_v19  ;;  %v44_v21 = vmul.f32 0.03125, %v42_v20 }
 0x12c   :  { %v46_v22 = vadd.f32 1e-05, %v44_v21 }
 0x12e   :  { %238 = vrsqrt.f32 %v46_v22 }
 0x134   :  { %v237_v23 = vpop.eup %236 }
 0x135   :  { %v49_v24 = vmul.f32 %v237_v23, %v33_v6 }
 0x137   :  { %v58_v28 = vmul.f32 %v205_v25, %v49_v24 }
 0x138   :  { %v239_v26 = vpop.eup %238 }
 0x139   :  { %v50_v27 = vmul.f32 %v239_v26, %v34_v10  ;;  %v67_v31 = vadd.f32 %v206_v29, %v58_v28 }
 0x13b   :  { %v59_v30 = vmul.f32 %v205_v25, %v50_v27 }
 0x13d   :  { %v68_v32 = vadd.f32 %v206_v29, %v59_v30 }
 0x13f   :  { %v69_v33 = vpack.c.bf16 %v68_v32, %v67_v31 }
 0x141   :  { %228 = vmatmul.mubr.msk.bf16.vlgmr.msra.gmra.mrb[0].mxu0 %vm23_vm0, %v69_v33 }
 0x214   :  { %v130_v35 = vpop.f32.mrb[0].mxu0 }
 0x215   :  { %v131_v36 = vadd.f32 %v207_v34, %v130_v35  ;;  %v229_v37 = vpop.f32.mrb[1].mxu0 }
 0x216   :  { %v133_v38 = vpop.f32.mrb[2].mxu0 }
 0x217   :  { %v139_v39 = vmul.f32 0.70710677, %v131_v36  ;;  %v134_v40 = vadd.f32 %v207_v34, %v133_v38  ;;  %v230_v41 = vpop.f32.mrb[3].mxu0  ;;  %v137_v23 = vmul.f32 0.5, %v131_v36 }
 0x219   :  { %v145_v42 = vand.u32 2147483647, %v139_v39  ;;  %v140_v43 = vmul.f32 0.70710677, %v134_v40  ;;  %vm141_vm2 = vcmp.lt.f32.partialorder %v139_v39, 0.0  ;;  %v138_v24 = vmul.f32 0.5, %v134_v40 }
 0x21a   :  { %v143_v16 = vsel %vm141_vm2, -1.0, %v250_v15 }
 0x21b   :  { %v147_v44 = vmul.f32 0.3275911, %v145_v42  ;;  %v146_v45 = vand.u32 2147483647, %v140_v43  ;;  %v173_v49 = vsub.f32 0.0, %v145_v42  ;;  %vm142_vm3 = vcmp.lt.f32.partialorder %v140_v43, 0.0 }
 0x21c   :  { %v144_v20 = vsel %vm142_vm3, -1.0, %v250_v15 }
 0x21d   :  { %v149_v46 = vadd.f32 1.0, %v147_v44  ;;  %v148_v47 = vmul.f32 0.3275911, %v146_v45  ;;  %v174_v50 = vsub.f32 0.0, %v146_v45  ;;  %v175_v52 = vmul.f32 %v173_v49, %v145_v42 }
 0x21f   :  { %240 = vrcp.f32 %v149_v46  ;;  %v150_v48 = vadd.f32 1.0, %v148_v47  ;;  %v176_v56 = vmul.f32 %v174_v50, %v146_v45  ;;  %v177_v57 = vmul.f32 1.442695, %v175_v52 }
 0x221   :  { %242 = vrcp.f32 %v150_v48  ;;  %v179_v62 = vmul.f32 1.442695, %v176_v56 }
 0x222   :  { %244 = vpow2.f32 %v177_v57 }
 0x223   :  { %246 = vpow2.f32 %v179_v62 }
 0x229   :  { %v241_v51 = vpop.eup %240 }
 0x22a   :  { %v155_v53 = vmul.f32 1.0614054, %v241_v51 }
 0x22b   :  { %v243_v54 = vpop.eup %242 }
 0x22c   :  { %v157_v55 = vadd.f32 -1.4531521, %v155_v53  ;;  %v156_v58 = vmul.f32 1.0614054, %v243_v54  ;;  %v245_v9 = vpop.eup %244 }
 0x22d   :  { %v247_v13 = vpop.eup %246 }
 0x22e   :  { %v159_v59 = vmul.f32 %v241_v51, %v157_v55  ;;  %v158_v60 = vadd.f32 -1.4531521, %v156_v58 }
 0x230   :  { %v161_v61 = vadd.f32 1.4214138, %v159_v59  ;;  %v160_v63 = vmul.f32 %v243_v54, %v158_v60 }
 0x232   :  { %v163_v0 = vmul.f32 %v241_v51, %v161_v61  ;;  %v162_v1 = vadd.f32 1.4214138, %v160_v63 }
 0x234   :  { %v165_v2 = vadd.f32 -0.28449672, %v163_v0  ;;  %v164_v3 = vmul.f32 %v243_v54, %v162_v1 }
 0x236   :  { %v167_v4 = vmul.f32 %v241_v51, %v165_v2  ;;  %v166_v5 = vadd.f32 -0.28449672, %v164_v3 }
 0x238   :  { %v169_v6 = vadd.f32 0.2548296, %v167_v4  ;;  %v168_v7 = vmul.f32 %v243_v54, %v166_v5 }
 0x23a   :  { %v171_v8 = vmul.f32 %v241_v51, %v169_v6  ;;  %v170_v10 = vadd.f32 0.2548296, %v168_v7 }
 0x23c   :  { %v181_v11 = vmul.f32 %v245_v9, %v171_v8  ;;  %v172_v12 = vmul.f32 %v243_v54, %v170_v10 }
 0x23e   :  { %v183_v14 = vsub.f32 1.0, %v181_v11  ;;  %v182_v17 = vmul.f32 %v247_v13, %v172_v12 }
 0x240   :  { %v185_v18 = vmul.f32 %v183_v14, %v143_v16  ;;  %v184_v19 = vsub.f32 1.0, %v182_v17 }
 0x242   :  { %v187_v21 = vadd.f32 1.0, %v185_v18  ;;  %v186_v22 = vmul.f32 %v184_v19, %v144_v20 }
 0x244   :  { %v188_v25 = vadd.f32 1.0, %v186_v22  ;;  %v189_v26 = vmul.f32 %v187_v21, %v137_v23 }
 0x246   :  { %v190_v27 = vmul.f32 %v188_v25, %v138_v24 }
 0x248   :  { %v218_v28 = vpack.c.bf16 %v190_v27, %v189_v26 }
 0x24a   :  { %219 = vst [vmem:[%s315_s5] sm:$0xff] %v218_v28  }

// kernel: _lambda_.15
= control target key start
LH: loop header
LB: loop body
LE: loop exit
PB: predicated region body
PF: predicated region fallthrough
CT: control target
= control target key end

     0   :  { %vm22_vm0 = vcmask 261120   ;;  %v219_v0 = vmov 0.0   ;;  %vm220_vm1 = vmmov 0   ;;  %s294_s1 = inlined_call_operand.vmem [shape: bf16[128,32], index: 1, kind: input, shape index: {}]   ;;  %s295_s0 = inlined_call_operand.vmem [shape: bf16[16,128], index: 0, kind: input, shape index: {}]   ;;  %s296_s2 = inlined_call_operand.vmem [shape: f32[1,32], index: 2, kind: input, shape index: {}]   ;;  %s297_s3 = inlined_call_operand.vmem [shape: f32[16,32], index: 3, kind: input, shape index: {}]   ;;  %s298_s4 = inlined_call_operand.vmem [shape: f32[16,32], index: 4, kind: output, shape index: {}]  }
   0x1   :  { %188 = vmatprep.subr.bf16.mxu0 %v219_v0  ;;  %v210_v1 = vld [vmem:[%s294_s1] sm:$0xff]   ;;  %204 = vmatprep.mubr.msk.bf16.mxu0 %vm220_vm1, %v219_v0  ;;  %23 = vst.msk [vmem:[#allocation2] sm:$0xff] %vm22_vm0, %v219_v0  ;;  %24 = vst.msk [vmem:[#allocation2 + $0x8] sm:$0xff] %vm22_vm0, %v219_v0  ;;  %v211_v2 = vld [vmem:[%s294_s1 + $0x8] sm:$0xff]  }
   0x2   :  { %189 = vmatpush3.bf16.msra.mxu0 %v210_v1  ;;  %v212_v3 = vld [vmem:[%s294_s1 + $0x10] sm:$0xff]   ;;  %v213_v4 = vld [vmem:[%s294_s1 + $0x18] sm:$0xff]   ;;  %v214_v5 = vld [vmem:[%s294_s1 + $0x20] sm:$0xff]  }
   0x3   :  { %190 = vmatprep.subr.bf16.mxu0 %v219_v0  ;;  %v215_v6 = vld [vmem:[%s294_s1 + $0x28] sm:$0xff]   ;;  %v216_v7 = vld [vmem:[%s294_s1 + $0x30] sm:$0xff]   ;;  %v217_v8 = vld [vmem:[%s294_s1 + $0x38] sm:$0xff]  }
   0x4   :  { %v218_v9 = vld [vmem:[%s295_s0] sm:$0xff]   ;;  %v160_v22 = vld [vmem:[%s297_s3 + $0x8] sm:$0xff] }
   0x5   :  { %v178_v18 = vld [vmem:[%s296_s2] ss:$0 sm:$0xff] }
   0x6   :  { %191 = vmatpush3.bf16.msra.mxu0 %v211_v2  ;;  %v159_v20 = vld [vmem:[%s297_s3] sm:$0xff] }
   0x7   :  { %192 = vmatprep.subr.bf16.mxu0 %v219_v0 }
   0x8   :  { %v25_v10 = vld [vmem:[#allocation2] sm:$0xff]  ;;  %v26_v12 = vld [vmem:[#allocation2 + $0x8] sm:$0xff] }
   0xa   :  { %193 = vmatpush3.bf16.msra.mxu0 %v212_v3 }
   0xb   :  { %194 = vmatprep.subr.bf16.mxu0 %v219_v0 }
   0xe   :  { %195 = vmatpush3.bf16.msra.mxu0 %v213_v4 }
   0xf   :  { %196 = vmatprep.subr.bf16.mxu0 %v219_v0 }
  0x12   :  { %197 = vmatpush3.bf16.msra.mxu0 %v214_v5 }
  0x13   :  { %198 = vmatprep.subr.bf16.mxu0 %v219_v0 }
  0x16   :  { %199 = vmatpush3.bf16.msra.mxu0 %v215_v6 }
  0x17   :  { %200 = vmatprep.subr.bf16.mxu0 %v219_v0 }
  0x1a   :  { %201 = vmatpush3.bf16.msra.mxu0 %v216_v7 }
  0x1b   :  { %202 = vmatprep.subr.bf16.mxu0 %v219_v0 }
  0x1e   :  { %203 = vmatpush3.bf16.msra.mxu0 %v217_v8 }
  0x21   :  { %205 = vmatmul.mubr.bf16.vlgmr.msra.gmra.mrb[0].mxu0 %v218_v9 }
  0xf4   :  { %v133_v11 = vpop.f32.mrb[0].mxu0 }
  0xf5   :  { %v140_v13 = vadd.f32 %v133_v11, %v25_v10  ;;  %v206_v14 = vpop.f32.mrb[1].mxu0 }
  0xf6   :  { %v136_v15 = vpop.f32.mrb[2].mxu0 }
  0xf7   :  { %143 = vst.msk [vmem:[#allocation2] sm:$0xff] %vm22_vm0, %v140_v13  ;;  %v141_v16 = vadd.f32 %v136_v15, %v26_v12  ;;  %v207_v17 = vpop.f32.mrb[3].mxu0 }
  0xf9   :  { %144 = vst.msk [vmem:[#allocation2 + $0x8] sm:$0xff] %vm22_vm0, %v141_v16 }
  0xfe   :  { %v148_v19 = vld [vmem:[#allocation2] sm:$0xff] }
  0xff   :  { %v157_v21 = vadd.f32 %v178_v18, %v148_v19 }
 0x100   :  { %v149_v23 = vld [vmem:[#allocation2 + $0x8] sm:$0xff] }
 0x101   :  { %v161_v24 = vadd.f32 %v159_v20, %v157_v21  ;;  %v158_v25 = vadd.f32 %v178_v18, %v149_v23 }
 0x103   :  { %163 = vst.msk [vmem:[%s298_s4] sm:$0xff] %vm22_vm0, %v161_v24  ;;  %v162_v26 = vadd.f32 %v160_v22, %v158_v25 }
 0x105   :  { %164 = vst.msk [vmem:[%s298_s4 + $0x8] sm:$0xff] %vm22_vm0, %v162_v26 }

// kernel: _lambda_.21
= control target key start
LH: loop header
LB: loop body
LE: loop exit
PB: predicated region body
PF: predicated region fallthrough
CT: control target
= control target key end

     0   :  { %vm21_vm0 = vcmask 261120   ;;  %s263_s0 = inlined_call_operand.vmem [shape: f32[16,32], index: 0, kind: input, shape index: {}]   ;;  %s264_s1 = inlined_call_operand.vmem [shape: f32[1,32], index: 1, kind: input, shape index: {}]   ;;  %s265_s2 = inlined_call_operand.vmem [shape: f32[1,32], index: 2, kind: input, shape index: {}]   ;;  %s266_s3 = inlined_call_operand.vmem [shape: bf16[32,64], index: 3, kind: input, shape index: {}]   ;;  %s267_s4 = inlined_call_operand.hbm [shape: f32[16,64], index: 4, kind: output, shape index: {}]  }
   0x1   :  { %v19_v0 = vld [vmem:[%s263_s0] sm:$0xff]  ;;  %v20_v1 = vld [vmem:[%s263_s0 + $0x8] sm:$0xff] }
   0x2   :  { %v22_v2 = vsel %vm21_vm0, %v19_v0, 0.0 }
   0x3   :  { %23 = vadd.xlane.f32.xlu0 %v22_v2 }
   0x4   :  { %9 = vsyncpa [#allocation3], 0  ;;  %v25_v3 = vsel %vm21_vm0, %v20_v1, 0.0  ;;  %v168_v14 = vld [vmem:[%s266_s3] sm:$0xff]   ;;  %v198_v15 = vmov 0.0   ;;  %v169_v16 = vld [vmem:[%s266_s3 + $0x8] sm:$0xff]  }
   0x5   :  { %155 = vmatprep.subr.bf16.mxu0 %v198_v15  ;;  %vm199_vm1 = vmmov 0   ;;  %v147_v25 = vld [vmem:[%s264_s1] ss:$0 sm:$0xff]  ;;  %s200_s25 = smov [#allocation2]   ;;  %vm128_vm2 = vcmask 523264  }
   0x6   :  { %156 = vmatpush3.bf16.msra.mxu0 %v168_v14  ;;  %159 = vmatprep.mubr.msk.bf16.mxu0 %vm199_vm1, %v198_v15  ;;  %v148_v29 = vld [vmem:[%s265_s2] ss:$0 sm:$0xff]  ;;  %s136_s26 = sshll.u32 %s200_s25, 4  ;;  %s137_s26 = int_to_ptr.vmem [resolvable:$true] %s136_s26 }
   0x7   :  { %26 = vadd.xlane.f32.xlu0 %v25_v3  ;;  %157 = vmatprep.subr.bf16.mxu0 %v198_v15  ;;  %s174_s1 = scalar_lea.vmem %s137_s26, 256  ;;  %p179_p1 = scmp.lt.s32.totalorder %s137_s26, %s137_s26 }
   0x8   :  { %p175_p0 = scmp.ne.s32.totalorder %s137_s26, %s174_s1  ;;  %p180_p2 = scmp.lt.s32.totalorder %s174_s1, %s174_s1 }
   0xa   :  { %158 = vmatpush3.bf16.msra.mxu0 %v169_v16  ;;  %p181_p3 = por %p180_p2, %p179_p1 }
   0xc   :  { %p182_p4 = pnand %p181_p3, %p175_p0 }
  0x90   :  { %v24_v4 = vpop.xlane.xlu0 %23 }
  0x91   :  { %v29_v5 = vmul.f32 0.03125, %v24_v4 }
  0x93   :  { %v31_v6 = vsub.f32 %v19_v0, %v29_v5 }
  0x94   :  { %v27_v7 = vpop.xlane.xlu0 %26 }
  0x95   :  { %v30_v8 = vmul.f32 0.03125, %v27_v7  ;;  %v33_v9 = vmul.f32 %v31_v6, %v31_v6 }
  0x97   :  { %v32_v10 = vsub.f32 %v20_v1, %v30_v8  ;;  %v35_v11 = vsel %vm21_vm0, %v33_v9, 0.0 }
  0x98   :  { %36 = vadd.xlane.f32.xlu1 %v35_v11 }
  0x99   :  { %v34_v12 = vmul.f32 %v32_v10, %v32_v10 }
  0x9b   :  { %v38_v13 = vsel %vm21_vm0, %v34_v12, 0.0 }
  0x9c   :  { %39 = vadd.xlane.f32.xlu1 %v38_v13 }
 0x125   :  { %v37_v17 = vpop.xlane.xlu1 %36 }
 0x126   :  { %v41_v18 = vmul.f32 0.03125, %v37_v17 }
 0x128   :  { %v43_v19 = vadd.f32 1e-05, %v41_v18 }
 0x129   :  { %v40_v20 = vpop.xlane.xlu1 %39 }
 0x12a   :  { %170 = vrsqrt.f32 %v43_v19  ;;  %v42_v21 = vmul.f32 0.03125, %v40_v20 }
 0x12c   :  { %v44_v22 = vadd.f32 1e-05, %v42_v21 }
 0x12e   :  { %172 = vrsqrt.f32 %v44_v22 }
 0x134   :  { %v171_v23 = vpop.eup %170 }
 0x135   :  { %v47_v24 = vmul.f32 %v171_v23, %v31_v6 }
 0x137   :  { %v56_v28 = vmul.f32 %v147_v25, %v47_v24 }
 0x138   :  { %v173_v26 = vpop.eup %172 }
 0x139   :  { %v48_v27 = vmul.f32 %v173_v26, %v32_v10  ;;  %v65_v31 = vadd.f32 %v148_v29, %v56_v28 }
 0x13b   :  { %v57_v30 = vmul.f32 %v147_v25, %v48_v27 }
 0x13d   :  { %v66_v32 = vadd.f32 %v148_v29, %v57_v30 }
 0x13f   :  { %v67_v33 = vpack.c.bf16 %v66_v32, %v65_v31 }
 0x141   :  { %160 = vmatmul.mubr.msk.bf16.vlgmr.msra.gmra.mrb[0].mxu0 %vm21_vm0, %v67_v33 }
 0x214   :  { %v121_v34 = vpop.f32.mrb[0].mxu0 }
 0x215   :  { %129 = vst.msk [vmem:[#allocation2] sm:$0xff] %vm128_vm2, %v121_v34  ;;  %v161_v35 = vpop.f32.mrb[1].mxu0 }
 0x216   :  { %v124_v36 = vpop.f32.mrb[2].mxu0 }
 0x217   :  { %130 = vst.msk [vmem:[#allocation2 + $0x8] sm:$0xff] %vm128_vm2, %v124_v36  ;;  %v162_v37 = vpop.f32.mrb[3].mxu0 }
 0x218   :  { %185 = shalt.err (!%p182_p4)
}
 0x219   :  { %s186_s28 = scalar_lea.hbm %s267_s4, 256 }
 0x21a   :  { %p187_p5 = scmp.ne.s32.totalorder %s267_s4, %s186_s28  ;;  %p190_p6 = scmp.lt.u32.totalorder %s186_s28, %s267_s4 }
 0x21c   :  { %p192_p7 = pnand %p190_p6, %p187_p5 }
 0x21e   :  { %195 = shalt.err (!%p192_p7)
}
 0x21f   :  { %s201_s7 = smov 128   ;;  %s202_s8 = smov 8  }
 0x220   :  { %142 = dma.vmem_to_hbm [thread:$0]  %s137_s26, 256, %s267_s4, [#allocation3], %s201_s7, %s201_s7, %s202_s8  }
 0x221   :  { %196 = dma.done.wait [#allocation3], 256  }
 0x222   :  { %197 = vsyncadd [#allocation3], 4294967040 }
 0x223   :  { %146 = vsyncpa [#allocation3], 1 }

</bundles_post_ra>
